<compile_context>
chip_gen: v7x
topology: tpu7x:2x2x1
jax: 0.10.0
libtpu: 0.0.40
codegen_flags: <defaults>
</compile_context>

<pallas_src>
import functools
import math

import jax
import jax.numpy as jnp
from jax.experimental import pallas as pl
from jax.experimental.pallas import tpu as pltpu

INPUT_DIM = 24      # sender feature dim
STATE_DIM = 32      # receiver state dim
CODE_DIM = 16
NUM_HEADS = 1
HEAD_DIM = 64
QKV_DIM = NUM_HEADS * HEAD_DIM
FFN_HIDDEN = 4 * STATE_DIM          # capacity_factor = 1.0
RSRC_DIM = STATE_DIM + CODE_DIM     # merged receiver input: [states | codes]
LN_EPS = 1e-5
LANES = 128
ATTN_SCALE = 1.0 / math.sqrt(HEAD_DIM)


def _round_up(x, m):
    return (x + m - 1) // m * m


# ---------------- fused parameter slabs ----------------
# f32 vector slab: one 128-lane row per gain / bias (layer scales and the softmax scale
# are folded into the weights/biases at pack time).
VEC_ORDER = [
    ("g_r", STATE_DIM), ("b_r", STATE_DIM), ("g_s", INPUT_DIM), ("b_s", INPUT_DIM),
    ("bq", QKV_DIM), ("bkv", 2 * QKV_DIM), ("bo", STATE_DIM),
    ("g_f", STATE_DIM), ("b_f", STATE_DIM), ("b1", FFN_HIDDEN), ("b2", STATE_DIM),
]
VEC_DIMS = dict(VEC_ORDER)
VEC_ROW = {name: i for i, (name, _) in enumerate(VEC_ORDER)}
VEC_SLAB_ROWS = _round_up(len(VEC_ORDER), 8)

# bf16 weight slab: pre-transposed (in_dim, out_dim) blocks stacked along rows, every
# block's row offset aligned to 16 (bf16 sublane tile).
#   wmod : (48,128) rows 32:48 = [wqm^T | 0 | wom^T]   (modulations from merged rsrc)
#   wq   : (32, 64) wq^T * 1/sqrt(head_dim)
#   wkv  : (24,128) [wk^T | wv^T]                       (k/v fused along N)
#   wo   : (128,32) rows 64:128 = wo^T * ls_attn        (rows 0:64 zero -> kill p@k lanes)
#   w1m  : (48, 32) rows 32:48 = w1m^T
#   w1   : (32,128) w1^T
#   w2m  : (48,128) rows 32:48 = w2m^T
#   w2   : (128,32) w2^T * ls_ffn
W_LAYOUT = [
    ("wmod", RSRC_DIM, LANES), ("wq", STATE_DIM, QKV_DIM), ("wkv", INPUT_DIM, LANES),
    ("wo", 2 * QKV_DIM, STATE_DIM), ("w1m", RSRC_DIM, STATE_DIM),
    ("w1", STATE_DIM, FFN_HIDDEN), ("w2m", RSRC_DIM, FFN_HIDDEN),
    ("w2", FFN_HIDDEN, STATE_DIM),
]
_W_OFF = {}
_off = 0
for _n, _r, _c in W_LAYOUT:
    _W_OFF[_n] = (_off, _r, _c)
    _off += _round_up(_r, 16)
W_SLAB_ROWS = _round_up(_off, 16)


def pack_params(p):
    """Fuse all parameters into one bf16 weight slab + one f32 vector slab.

    Also folds: 1/sqrt(head_dim) into wq/bq, ls_attn into wo/bo, ls_ffn into w2/b2, and
    zero-pads the modulation weights to 48 contraction rows so the merged
    [states | codes] receiver input can be used directly as their LHS.
    """
    f32 = jnp.float32
    ls_attn = p["ls_attn"].reshape(STATE_DIM).astype(f32)
    ls_ffn = p["ls_ffn"].reshape(STATE_DIM).astype(f32)

    def modpad(wm_t):   # (code, n) -> (48, n): zero rows for the state lanes of rsrc
        return jnp.concatenate(
            [jnp.zeros((STATE_DIM, wm_t.shape[1]), f32), wm_t.astype(f32)], axis=0)

    blocks = {
        "wmod": modpad(jnp.concatenate(
            [p["wqm"].T.astype(f32),
             jnp.zeros((CODE_DIM, QKV_DIM - STATE_DIM), f32),
             p["wom"].T.astype(f32)], axis=1)),
        "wq": p["wq"].T.astype(f32) * ATTN_SCALE,
        "wkv": jnp.concatenate([p["wk"].T.astype(f32), p["wv"].T.astype(f32)], axis=1),
        "wo": jnp.concatenate(
            [jnp.zeros((QKV_DIM, STATE_DIM), f32),
             p["wo"].T.astype(f32) * ls_attn[None, :]], axis=0),
        "w1m": modpad(p["w1m"].T),
        "w1": p["w1"].T.astype(f32),
        "w2m": modpad(p["w2m"].T),
        "w2": p["w2"].T.astype(f32) * ls_ffn[None, :],
    }
    w = jnp.zeros((W_SLAB_ROWS, LANES), f32)
    for name, (off, rows, cols) in _W_OFF.items():
        assert blocks[name].shape == (rows, cols), (name, blocks[name].shape)
        w = w.at[off:off + rows, :cols].set(blocks[name])

    vecs = {
        "g_r": p["g_r"].reshape(STATE_DIM), "b_r": p["b_r"].reshape(STATE_DIM),
        "g_s": p["g_s"].reshape(INPUT_DIM), "b_s": p["b_s"].reshape(INPUT_DIM),
        "bq": p["bq"].reshape(QKV_DIM) * ATTN_SCALE,
        "bkv": jnp.concatenate([p["bk"].reshape(QKV_DIM), p["bv"].reshape(QKV_DIM)]),
        "bo": p["bo"].reshape(STATE_DIM) * ls_attn,
        "g_f": p["g_f"].reshape(STATE_DIM), "b_f": p["b_f"].reshape(STATE_DIM),
        "b1": p["b1"].reshape(FFN_HIDDEN),
        "b2": p["b2"].reshape(STATE_DIM) * ls_ffn,
    }
    vec = jnp.zeros((VEC_SLAB_ROWS, LANES), f32)
    for name, dim in VEC_ORDER:
        vec = vec.at[VEC_ROW[name], :dim].set(vecs[name].astype(f32))
    return w.astype(jnp.bfloat16), vec


# ---------------- kernel ----------------
def _make_kernel(s_valid, s_pad):
    need_mask = s_valid < s_pad   # static: only emit softmax masking if S was padded

    def kernel(rsrc_ref, ss_ref, w_ref, vec_ref, out_ref):
        TB, R, _ = rsrc_ref.shape
        S = ss_ref.shape[1]
        f32, bf16 = jnp.float32, jnp.bfloat16

        def wblk(name):
            off, rows, cols = _W_OFF[name]
            return w_ref[off:off + rows, :cols]

        def vrow(name):
            i = VEC_ROW[name]
            return vec_ref[i:i + 1, :VEC_DIMS[name]]

        def ln(x, g, b):
            mu = jnp.mean(x, axis=-1, keepdims=True)
            var = jnp.mean((x - mu) ** 2, axis=-1, keepdims=True)
            return (x - mu) * jax.lax.rsqrt(var + LN_EPS) * g + b

        # Flatten (batch, token) onto MXU rows; feature dims stay on lanes.
        rsrc = rsrc_ref[...].reshape(TB * R, RSRC_DIM)       # [states | codes]
        ss = ss_ref[...].reshape(TB * S, INPUT_DIM)

        rs = rsrc[:, :STATE_DIM]                             # leading-lane slice (free)
        rsrc_b = rsrc.astype(bf16)                           # LHS of all modulation matmuls

        # Fused modulations: lanes 0:32 = mod_q, lanes 64:128 = mod_o (32:64 stay zero).
        mods = jnp.dot(rsrc_b, wblk("wmod"), preferred_element_type=f32)
        one_p_mods = 1.0 + mods

        # ---------------- ReadInAttention (pre-LN, no residual) ----------------
        rs_n = ln(rs, vrow("g_r"), vrow("b_r"))
        ss_n = ln(ss, vrow("g_s"), vrow("b_s"))

        q = jnp.dot((rs_n * one_p_mods[:, :STATE_DIM]).astype(bf16), wblk("wq"),
                    preferred_element_type=f32) + vrow("bq")       # pre-scaled by 1/sqrt(d)
        kv = jnp.dot(ss_n.astype(bf16), wblk("wkv"),
                     preferred_element_type=f32) + vrow("bkv")     # [k | v] on lanes

        kv_b = kv.astype(bf16)
        q3 = q.astype(bf16).reshape(TB, R, QKV_DIM)
        k3 = kv_b[:, :QKV_DIM].reshape(TB, S, QKV_DIM)
        kv3 = kv_b.reshape(TB, S, 2 * QKV_DIM)

        logits = jnp.einsum("brd,bsd->brs", q3, k3, preferred_element_type=f32)
        if need_mask:   # mask host-padded sender rows out of the softmax (static)
            col = jax.lax.broadcasted_iota(jnp.int32, (TB, R, S), 2)
            logits = jnp.where(col < s_valid, logits, -1e30)
        logits = logits - jnp.max(logits, axis=-1, keepdims=True)
        p = jnp.exp(logits)
        p = p * pl.reciprocal(jnp.sum(p, axis=-1, keepdims=True), approx=True)

        # p @ [k|v]: lanes 64:128 hold p@v; the junk p@k lanes 0:64 are annihilated by
        # the zero rows 0:64 of the output-projection block, so no lane slicing is needed.
        attn = jnp.einsum("brs,bsd->brd", p.astype(bf16), kv3,
                          preferred_element_type=f32).reshape(TB * R, 2 * QKV_DIM)
        x = jnp.dot((attn * one_p_mods).astype(bf16), wblk("wo"),
                    preferred_element_type=f32) + vrow("bo")       # ls_attn folded in

        # ---------------- ModFFN (pre-LN, residual; ls_ffn folded into w2/b2) ----------
        x_n = ln(x, vrow("g_f"), vrow("b_f"))
        mod1 = jnp.dot(rsrc_b, wblk("w1m"), preferred_element_type=f32)
        h = jnp.dot((x_n * (1.0 + mod1)).astype(bf16), wblk("w1"),
                    preferred_element_type=f32) + vrow("b1")
        # TODO(synk): assumes tanh-approx GELU; switch to erf if the torch ModFFN uses nn.GELU().
        h = jax.nn.gelu(h, approximate=True)
        mod2 = jnp.dot(rsrc_b, wblk("w2m"), preferred_element_type=f32)
        y = jnp.dot((h * (1.0 + mod2)).astype(bf16), wblk("w2"),
                    preferred_element_type=f32) + vrow("b2")

        out_ref[...] = (x + y).reshape(TB, R, STATE_DIM).astype(out_ref.dtype)

    return kernel


# ---------------- wrapper ----------------
def attentive_read_in(receiver_states, receiver_codes, sender_states, params,
                      *, block_b=256, vmem_limit_bytes=48 * 1024 * 1024):
    # block_b/vmem_limit defaults are safe on v5e/v6e/v7x; on v5e/v6e raising to
    # block_b=512-1024 with vmem_limit_bytes=64-96 MiB amortizes per-step overhead further.
    B, R, _ = receiver_states.shape
    S = sender_states.shape[1]

    w_slab, vec_slab = pack_params(params)

    # Pad R / S to sublane multiples so in-kernel reshapes are layout no-ops.
    R_pad, S_pad = _round_up(R, 8), _round_up(S, 8)
    if R_pad != R:
        receiver_states = jnp.pad(receiver_states, ((0, 0), (0, R_pad - R), (0, 0)))
        receiver_codes = jnp.pad(receiver_codes, ((0, 0), (0, R_pad - R), (0, 0)))
    if S_pad != S:
        sender_states = jnp.pad(sender_states, ((0, 0), (0, S_pad - S), (0, 0)))

    # Merge receiver states+codes into one lane-dense input (one DMA stream / half the
    # receiver-side VMEM).  Codes are consumed via 48-row zero-padded modulation weights.
    rsrc = jnp.concatenate([receiver_states.astype(jnp.float32),
                            receiver_codes.astype(jnp.float32)], axis=-1)
    sender_states = sender_states.astype(jnp.float32)

    TB = min(block_b, B)
    if TB == B and B > 1:
        TB = pl.cdiv(B, 2)   # keep >=2 grid steps so both v7x TensorCores get work
    Bp = pl.cdiv(B, TB) * TB
    if Bp != B:              # host-side batch padding so every grid step is full
        rsrc = jnp.pad(rsrc, ((0, Bp - B), (0, 0), (0, 0)))
        sender_states = jnp.pad(sender_states, ((0, Bp - B), (0, 0), (0, 0)))
    grid = (Bp // TB,)

    in_specs = [
        pl.BlockSpec((TB, R_pad, RSRC_DIM), lambda b: (b, 0, 0)),
        pl.BlockSpec((TB, S_pad, INPUT_DIM), lambda b: (b, 0, 0)),
        pl.BlockSpec(w_slab.shape, lambda b: (0, 0)),     # constant block -> DMA'd once
        pl.BlockSpec(vec_slab.shape, lambda b: (0, 0)),
    ]
    out_spec = pl.BlockSpec((TB, R_pad, STATE_DIM), lambda b: (b, 0, 0))

    # Advisory cost estimate for XLA's scheduler.
    macs_recv = (RSRC_DIM * (LANES + STATE_DIM + FFN_HIDDEN)       # wmod + w1m + w2m
                 + STATE_DIM * QKV_DIM + 2 * QKV_DIM * STATE_DIM   # q proj + out proj
                 + STATE_DIM * FFN_HIDDEN + FFN_HIDDEN * STATE_DIM)
    macs_send = INPUT_DIM * 2 * QKV_DIM
    macs_attn = R_pad * S_pad * (QKV_DIM + 2 * QKV_DIM)
    flops = 2 * Bp * (R_pad * macs_recv + S_pad * macs_send + macs_attn)
    transcendentals = Bp * R_pad * (S_pad + FFN_HIDDEN + 8)
    bytes_accessed = (4 * Bp * (R_pad * (RSRC_DIM + STATE_DIM) + S_pad * INPUT_DIM)
                      + 2 * int(w_slab.size) + 4 * int(vec_slab.size))

    out = pl.pallas_call(
        _make_kernel(S, S_pad),
        out_shape=jax.ShapeDtypeStruct((Bp, R_pad, STATE_DIM), jnp.float32),
        grid_spec=pltpu.PrefetchScalarGridSpec(
            num_scalar_prefetch=0,
            grid=grid,
            in_specs=in_specs,
            out_specs=out_spec,
        ),
        compiler_params=pltpu.CompilerParams(
            dimension_semantics=("parallel",),
            vmem_limit_bytes=vmem_limit_bytes,
        ),
        cost_estimate=pl.CostEstimate(flops=flops, transcendentals=transcendentals,
                                      bytes_accessed=bytes_accessed),
    )(rsrc, sender_states, w_slab, vec_slab)

    return out[:B, :R]


# ---------------- params & pure-JAX reference ----------------
def make_params(key):
    def w(k, shape, scale=0.02):
        return jax.random.normal(k, shape, jnp.float32) * scale

    ks = jax.random.split(key, 10)
    return dict(
        g_r=jnp.ones((1, STATE_DIM), jnp.float32),
        b_r=jnp.zeros((1, STATE_DIM), jnp.float32),
        g_s=jnp.ones((1, INPUT_DIM), jnp.float32),
        b_s=jnp.zeros((1, INPUT_DIM), jnp.float32),
        wqm=w(ks[0], (STATE_DIM, CODE_DIM)),
        wq=w(ks[1], (QKV_DIM, STATE_DIM)),
        bq=jnp.zeros((1, QKV_DIM), jnp.float32),
        wk=w(ks[2], (QKV_DIM, INPUT_DIM)),
        bk=jnp.zeros((1, QKV_DIM), jnp.float32),
        wv=w(ks[3], (QKV_DIM, INPUT_DIM)),
        bv=jnp.zeros((1, QKV_DIM), jnp.float32),
        wom=w(ks[4], (QKV_DIM, CODE_DIM)),
        wo=w(ks[5], (STATE_DIM, QKV_DIM)),
        bo=jnp.zeros((1, STATE_DIM), jnp.float32),
        ls_attn=jnp.full((1, STATE_DIM), 1.0, jnp.float32),
        g_f=jnp.ones((1, STATE_DIM), jnp.float32),
        b_f=jnp.zeros((1, STATE_DIM), jnp.float32),
        w1m=w(ks[6], (STATE_DIM, CODE_DIM)),
        w1=w(ks[7], (FFN_HIDDEN, STATE_DIM)),
        b1=jnp.zeros((1, FFN_HIDDEN), jnp.float32),
        w2m=w(ks[8], (FFN_HIDDEN, CODE_DIM)),
        w2=w(ks[9], (STATE_DIM, FFN_HIDDEN)),
        b2=jnp.zeros((1, STATE_DIM), jnp.float32),
        ls_ffn=jnp.full((1, STATE_DIM), 1e-6, jnp.float32),
    )


def reference(receiver_states, receiver_codes, sender_states, p):
    # Pure-f32 reference with the original module's (unfused) formulas.
    def ln(x, g, b):
        mu = jnp.mean(x, -1, keepdims=True)
        var = jnp.mean((x - mu) ** 2, -1, keepdims=True)
        return (x - mu) * jax.lax.rsqrt(var + LN_EPS) * g + b

    rs_n = ln(receiver_states, p["g_r"], p["b_r"])
    ss_n = ln(sender_states, p["g_s"], p["b_s"])
    mod_q = receiver_codes @ p["wqm"].T
    q = (rs_n * (1 + mod_q)) @ p["wq"].T + p["bq"]
    k = ss_n @ p["wk"].T + p["bk"]
    v = ss_n @ p["wv"].T + p["bv"]
    logits = jnp.einsum("brd,bsd->brs", q, k) / math.sqrt(HEAD_DIM)
    attn = jax.nn.softmax(logits, axis=-1) @ v
    mod_o = receiver_codes @ p["wom"].T
    x = ((attn * (1 + mod_o)) @ p["wo"].T + p["bo"]) * p["ls_attn"]
    x_n = ln(x, p["g_f"], p["b_f"])
    mod1 = receiver_codes @ p["w1m"].T
    h = jax.nn.gelu((x_n * (1 + mod1)) @ p["w1"].T + p["b1"], approximate=True)
    mod2 = receiver_codes @ p["w2m"].T
    y = (h * (1 + mod2)) @ p["w2"].T + p["b2"]
    return x + y * p["ls_ffn"]


if __name__ == "__main__":
    key = jax.random.PRNGKey(0)
    k_rs, k_rc, k_ss, k_p = jax.random.split(key, 4)

    # Small demo shapes; block_b=4 with B=6 exercises batch tiling (grid=(2,)) and the
    # host-side batch-padding path.
    B, R, S = 6, 8, 16
    receiver_states = jax.random.normal(k_rs, (B, R, STATE_DIM), jnp.float32)
    receiver_codes = jax.random.normal(k_rc, (B, R, CODE_DIM), jnp.float32)
    sender_states = jax.random.normal(k_ss, (B, S, INPUT_DIM), jnp.float32)
    params = make_params(k_p)

    # jit the wrapper so parameter packing / padding fold into the same XLA program.
    fwd = jax.jit(functools.partial(attentive_read_in, block_b=4))
    out = jax.block_until_ready(fwd(receiver_states, receiver_codes, sender_states, params))

    ref = reference(receiver_states, receiver_codes, sender_states, params)
    assert out.shape == (B, R, STATE_DIM)
    assert bool(jnp.all(jnp.isfinite(out)))
    # bf16 MXU operands -> compare against the f32 reference with a 3% relative tolerance.
    err = float(jnp.max(jnp.abs(out - ref)))
    scale = float(jnp.max(jnp.abs(ref)))
    assert err <= 3e-2 * scale + 1e-4, (err, scale)
    print("KERNEL_OK")
</pallas_src>

<mosaic_0001>
module attributes {stable_mosaic.version = 11 : i64} {
  func.func @kernel(%arg0: i32, %arg1: memref<4x8x48xf32, #tpu.memory_space<vmem>>, %arg2: memref<4x16x24xf32, #tpu.memory_space<vmem>>, %arg3: memref<496x128xbf16, #tpu.memory_space<vmem>>, %arg4: memref<16x128xf32, #tpu.memory_space<vmem>>, %arg5: memref<4x8x32xf32, #tpu.memory_space<vmem>>) attributes {dimension_semantics = [#tpu.dimension_semantics<parallel>], iteration_bounds = array<i64: 2>, scalar_prefetch = 0 : i64, scratch_operands = 0 : i64, tpu.core_type = #tpu.core_type<tc>, window_params = [{transform_indices = @transform_0, window_bounds = array<i64: 4, 8, 48>}, {transform_indices = @transform_1, window_bounds = array<i64: 4, 16, 24>}, {pipeline_mode = #tpu.pipeline_mode<synchronous>, transform_indices = @transform_2, window_bounds = array<i64: 496, 128>}, {pipeline_mode = #tpu.pipeline_mode<synchronous>, transform_indices = @transform_3, window_bounds = array<i64: 16, 128>}, {transform_indices = @transform_4, window_bounds = array<i64: 4, 8, 32>}]} {
    %c0 = arith.constant 0 : index
    %c0_0 = arith.constant 0 : index
    %c0_1 = arith.constant 0 : index
    %0 = vector.load %arg1[%c0, %c0_0, %c0_1] : memref<4x8x48xf32, #tpu.memory_space<vmem>>, vector<4x8x48xf32>
    %1 = vector.shape_cast %0 : vector<4x8x48xf32> to vector<32x48xf32>
    %c0_2 = arith.constant 0 : index
    %c0_3 = arith.constant 0 : index
    %c0_4 = arith.constant 0 : index
    %2 = vector.load %arg2[%c0_2, %c0_3, %c0_4] : memref<4x16x24xf32, #tpu.memory_space<vmem>>, vector<4x16x24xf32>
    %3 = vector.shape_cast %2 : vector<4x16x24xf32> to vector<64x24xf32>
    %4 = vector.extract_strided_slice %1 {offsets = [0, 0], sizes = [32, 32], strides = [1, 1]} : vector<32x48xf32> to vector<32x32xf32>
    %5 = arith.truncf %1 : vector<32x48xf32> to vector<32x48xbf16>
    %c0_5 = arith.constant 0 : index
    %c0_6 = arith.constant 0 : index
    %6 = vector.load %arg3[%c0_5, %c0_6] : memref<496x128xbf16, #tpu.memory_space<vmem>>, vector<48x128xbf16>
    %cst = arith.constant dense<0.000000e+00> : vector<32x128xf32>
    %7 = tpu.matmul %5, %6, %cst {dimension_numbers = #tpu.dot_dimension_numbers<[1], [0], [0], [1], [0, 0, 1, 1], [], []>} : vector<32x48xbf16>, vector<48x128xbf16>, vector<32x128xf32> -> vector<32x128xf32>
    %cst_7 = arith.constant 1.000000e+00 : f32
    %8 = vector.broadcast %cst_7 : f32 to vector<32x128xf32>
    %9 = arith.addf %8, %7 : vector<32x128xf32>
    %c0_8 = arith.constant 0 : index
    %c0_9 = arith.constant 0 : index
    %10 = vector.load %arg4[%c0_8, %c0_9] : memref<16x128xf32, #tpu.memory_space<vmem>>, vector<1x32xf32>
    %c1 = arith.constant 1 : index
    %c0_10 = arith.constant 0 : index
    %11 = vector.load %arg4[%c1, %c0_10] : memref<16x128xf32, #tpu.memory_space<vmem>>, vector<1x32xf32>
    %cst_11 = arith.constant dense<0.000000e+00> : vector<32xf32>
    %12 = vector.multi_reduction <add>, %4, %cst_11 [1] : vector<32x32xf32> to vector<32xf32>
    %13 = vector.shape_cast %12 : vector<32xf32> to vector<32x1xf32>
    %cst_12 = arith.constant 3.200000e+01 : f32
    %14 = vector.broadcast %cst_12 : f32 to vector<32x1xf32>
    %15 = arith.divf %13, %14 : vector<32x1xf32>
    %16 = vector.broadcast %15 : vector<32x1xf32> to vector<32x32xf32>
    %17 = arith.subf %4, %16 : vector<32x32xf32>
    %18 = arith.mulf %17, %17 : vector<32x32xf32>
    %cst_13 = arith.constant dense<0.000000e+00> : vector<32xf32>
    %19 = vector.multi_reduction <add>, %18, %cst_13 [1] : vector<32x32xf32> to vector<32xf32>
    %20 = vector.shape_cast %19 : vector<32xf32> to vector<32x1xf32>
    %cst_14 = arith.constant 3.200000e+01 : f32
    %21 = vector.broadcast %cst_14 : f32 to vector<32x1xf32>
    %22 = arith.divf %20, %21 : vector<32x1xf32>
    %23 = vector.broadcast %15 : vector<32x1xf32> to vector<32x32xf32>
    %24 = arith.subf %4, %23 : vector<32x32xf32>
    %cst_15 = arith.constant 9.99999974E-6 : f32
    %25 = vector.broadcast %cst_15 : f32 to vector<32x1xf32>
    %26 = arith.addf %22, %25 : vector<32x1xf32>
    %27 = math.rsqrt %26 : vector<32x1xf32>
    %28 = vector.broadcast %27 : vector<32x1xf32> to vector<32x32xf32>
    %29 = arith.mulf %24, %28 : vector<32x32xf32>
    %30 = vector.broadcast %10 : vector<1x32xf32> to vector<32x32xf32>
    %31 = arith.mulf %29, %30 : vector<32x32xf32>
    %32 = vector.broadcast %11 : vector<1x32xf32> to vector<32x32xf32>
    %33 = arith.addf %31, %32 : vector<32x32xf32>
    %c2 = arith.constant 2 : index
    %c0_16 = arith.constant 0 : index
    %34 = vector.load %arg4[%c2, %c0_16] : memref<16x128xf32, #tpu.memory_space<vmem>>, vector<1x24xf32>
    %c3 = arith.constant 3 : index
    %c0_17 = arith.constant 0 : index
    %35 = vector.load %arg4[%c3, %c0_17] : memref<16x128xf32, #tpu.memory_space<vmem>>, vector<1x24xf32>
    %cst_18 = arith.constant dense<0.000000e+00> : vector<64xf32>
    %36 = vector.multi_reduction <add>, %3, %cst_18 [1] : vector<64x24xf32> to vector<64xf32>
    %37 = vector.shape_cast %36 : vector<64xf32> to vector<64x1xf32>
    %cst_19 = arith.constant 2.400000e+01 : f32
    %38 = vector.broadcast %cst_19 : f32 to vector<64x1xf32>
    %39 = arith.divf %37, %38 : vector<64x1xf32>
    %40 = vector.broadcast %39 : vector<64x1xf32> to vector<64x24xf32>
    %41 = arith.subf %3, %40 : vector<64x24xf32>
    %42 = arith.mulf %41, %41 : vector<64x24xf32>
    %cst_20 = arith.constant dense<0.000000e+00> : vector<64xf32>
    %43 = vector.multi_reduction <add>, %42, %cst_20 [1] : vector<64x24xf32> to vector<64xf32>
    %44 = vector.shape_cast %43 : vector<64xf32> to vector<64x1xf32>
    %cst_21 = arith.constant 2.400000e+01 : f32
    %45 = vector.broadcast %cst_21 : f32 to vector<64x1xf32>
    %46 = arith.divf %44, %45 : vector<64x1xf32>
    %47 = vector.broadcast %39 : vector<64x1xf32> to vector<64x24xf32>
    %48 = arith.subf %3, %47 : vector<64x24xf32>
    %cst_22 = arith.constant 9.99999974E-6 : f32
    %49 = vector.broadcast %cst_22 : f32 to vector<64x1xf32>
    %50 = arith.addf %46, %49 : vector<64x1xf32>
    %51 = math.rsqrt %50 : vector<64x1xf32>
    %52 = vector.broadcast %51 : vector<64x1xf32> to vector<64x24xf32>
    %53 = arith.mulf %48, %52 : vector<64x24xf32>
    %54 = vector.broadcast %34 : vector<1x24xf32> to vector<64x24xf32>
    %55 = arith.mulf %53, %54 : vector<64x24xf32>
    %56 = vector.broadcast %35 : vector<1x24xf32> to vector<64x24xf32>
    %57 = arith.addf %55, %56 : vector<64x24xf32>
    %58 = vector.extract_strided_slice %9 {offsets = [0, 0], sizes = [32, 32], strides = [1, 1]} : vector<32x128xf32> to vector<32x32xf32>
    %59 = arith.mulf %33, %58 : vector<32x32xf32>
    %60 = arith.truncf %59 : vector<32x32xf32> to vector<32x32xbf16>
    %c48 = arith.constant 48 : index
    %c0_23 = arith.constant 0 : index
    %61 = vector.load %arg3[%c48, %c0_23] : memref<496x128xbf16, #tpu.memory_space<vmem>>, vector<32x64xbf16>
    %cst_24 = arith.constant dense<0.000000e+00> : vector<32x64xf32>
    %62 = tpu.matmul %60, %61, %cst_24 {dimension_numbers = #tpu.dot_dimension_numbers<[1], [0], [0], [1], [0, 0, 1, 1], [], []>} : vector<32x32xbf16>, vector<32x64xbf16>, vector<32x64xf32> -> vector<32x64xf32>
    %c4 = arith.constant 4 : index
    %c0_25 = arith.constant 0 : index
    %63 = vector.load %arg4[%c4, %c0_25] : memref<16x128xf32, #tpu.memory_space<vmem>>, vector<1x64xf32>
    %64 = vector.broadcast %63 : vector<1x64xf32> to vector<32x64xf32>
    %65 = arith.addf %62, %64 : vector<32x64xf32>
    %66 = arith.truncf %57 : vector<64x24xf32> to vector<64x24xbf16>
    %c80 = arith.constant 80 : index
    %c0_26 = arith.constant 0 : index
    %67 = vector.load %arg3[%c80, %c0_26] : memref<496x128xbf16, #tpu.memory_space<vmem>>, vector<24x128xbf16>
    %cst_27 = arith.constant dense<0.000000e+00> : vector<64x128xf32>
    %68 = tpu.matmul %66, %67, %cst_27 {dimension_numbers = #tpu.dot_dimension_numbers<[1], [0], [0], [1], [0, 0, 1, 1], [], []>} : vector<64x24xbf16>, vector<24x128xbf16>, vector<64x128xf32> -> vector<64x128xf32>
    %c5 = arith.constant 5 : index
    %c0_28 = arith.constant 0 : index
    %69 = vector.load %arg4[%c5, %c0_28] : memref<16x128xf32, #tpu.memory_space<vmem>>, vector<1x128xf32>
    %70 = vector.broadcast %69 : vector<1x128xf32> to vector<64x128xf32>
    %71 = arith.addf %68, %70 : vector<64x128xf32>
    %72 = arith.truncf %71 : vector<64x128xf32> to vector<64x128xbf16>
    %73 = arith.truncf %65 : vector<32x64xf32> to vector<32x64xbf16>
    %74 = vector.shape_cast %73 : vector<32x64xbf16> to vector<4x8x64xbf16>
    %75 = vector.extract_strided_slice %72 {offsets = [0, 0], sizes = [64, 64], strides = [1, 1]} : vector<64x128xbf16> to vector<64x64xbf16>
    %76 = vector.shape_cast %75 : vector<64x64xbf16> to vector<4x16x64xbf16>
    %77 = vector.shape_cast %72 : vector<64x128xbf16> to vector<4x16x128xbf16>
    "tpu.trace_start"() <{level = 10 : i32, message = "brd,bsd->brs"}> : () -> ()
    %cst_29 = arith.constant dense<0.000000e+00> : vector<4x8x16xf32>
    %78 = tpu.matmul %74, %76, %cst_29 {dimension_numbers = #tpu.dot_dimension_numbers<[2], [2], [1], [1], [0, 0, 0, 1, 1, 1], [0], [0]>} : vector<4x8x64xbf16>, vector<4x16x64xbf16>, vector<4x8x16xf32> -> vector<4x8x16xf32>
    "tpu.trace_stop"() : () -> ()
    %cst_30 = arith.constant dense<0xFF800000> : vector<4x8xf32>
    %79 = vector.multi_reduction <maximumf>, %78, %cst_30 [2] : vector<4x8x16xf32> to vector<4x8xf32>
    %80 = vector.shape_cast %79 : vector<4x8xf32> to vector<4x8x1xf32>
    %81 = vector.broadcast %80 : vector<4x8x1xf32> to vector<4x8x16xf32>
    %82 = arith.subf %78, %81 : vector<4x8x16xf32>
    %83 = math.exp %82 : vector<4x8x16xf32>
    %cst_31 = arith.constant dense<0.000000e+00> : vector<4x8xf32>
    %84 = vector.multi_reduction <add>, %83, %cst_31 [2] : vector<4x8x16xf32> to vector<4x8xf32>
    %85 = vector.shape_cast %84 : vector<4x8xf32> to vector<4x8x1xf32>
    %86 = tpu.reciprocal %85 {approx = true} : vector<4x8x1xf32> -> vector<4x8x1xf32>
    %87 = vector.broadcast %86 : vector<4x8x1xf32> to vector<4x8x16xf32>
    %88 = arith.mulf %83, %87 : vector<4x8x16xf32>
    %89 = arith.truncf %88 : vector<4x8x16xf32> to vector<4x8x16xbf16>
    "tpu.trace_start"() <{level = 10 : i32, message = "brs,bsd->brd"}> : () -> ()
    %cst_32 = arith.constant dense<0.000000e+00> : vector<4x8x128xf32>
    %90 = tpu.matmul %89, %77, %cst_32 {dimension_numbers = #tpu.dot_dimension_numbers<[2], [1], [1], [2], [0, 0, 0, 1, 1, 2], [0], [0]>} : vector<4x8x16xbf16>, vector<4x16x128xbf16>, vector<4x8x128xf32> -> vector<4x8x128xf32>
    "tpu.trace_stop"() : () -> ()
    %91 = vector.shape_cast %90 : vector<4x8x128xf32> to vector<32x128xf32>
    %92 = arith.mulf %91, %9 : vector<32x128xf32>
    %93 = arith.truncf %92 : vector<32x128xf32> to vector<32x128xbf16>
    %c112 = arith.constant 112 : index
    %c0_33 = arith.constant 0 : index
    %94 = vector.load %arg3[%c112, %c0_33] : memref<496x128xbf16, #tpu.memory_space<vmem>>, vector<128x32xbf16>
    %cst_34 = arith.constant dense<0.000000e+00> : vector<32x32xf32>
    %95 = tpu.matmul %93, %94, %cst_34 {dimension_numbers = #tpu.dot_dimension_numbers<[1], [0], [0], [1], [0, 0, 1, 1], [], []>} : vector<32x128xbf16>, vector<128x32xbf16>, vector<32x32xf32> -> vector<32x32xf32>
    %c6 = arith.constant 6 : index
    %c0_35 = arith.constant 0 : index
    %96 = vector.load %arg4[%c6, %c0_35] : memref<16x128xf32, #tpu.memory_space<vmem>>, vector<1x32xf32>
    %97 = vector.broadcast %96 : vector<1x32xf32> to vector<32x32xf32>
    %98 = arith.addf %95, %97 : vector<32x32xf32>
    %c7 = arith.constant 7 : index
    %c0_36 = arith.constant 0 : index
    %99 = vector.load %arg4[%c7, %c0_36] : memref<16x128xf32, #tpu.memory_space<vmem>>, vector<1x32xf32>
    %c8 = arith.constant 8 : index
    %c0_37 = arith.constant 0 : index
    %100 = vector.load %arg4[%c8, %c0_37] : memref<16x128xf32, #tpu.memory_space<vmem>>, vector<1x32xf32>
    %cst_38 = arith.constant dense<0.000000e+00> : vector<32xf32>
    %101 = vector.multi_reduction <add>, %98, %cst_38 [1] : vector<32x32xf32> to vector<32xf32>
    %102 = vector.shape_cast %101 : vector<32xf32> to vector<32x1xf32>
    %cst_39 = arith.constant 3.200000e+01 : f32
    %103 = vector.broadcast %cst_39 : f32 to vector<32x1xf32>
    %104 = arith.divf %102, %103 : vector<32x1xf32>
    %105 = vector.broadcast %104 : vector<32x1xf32> to vector<32x32xf32>
    %106 = arith.subf %98, %105 : vector<32x32xf32>
    %107 = arith.mulf %106, %106 : vector<32x32xf32>
    %cst_40 = arith.constant dense<0.000000e+00> : vector<32xf32>
    %108 = vector.multi_reduction <add>, %107, %cst_40 [1] : vector<32x32xf32> to vector<32xf32>
    %109 = vector.shape_cast %108 : vector<32xf32> to vector<32x1xf32>
    %cst_41 = arith.constant 3.200000e+01 : f32
    %110 = vector.broadcast %cst_41 : f32 to vector<32x1xf32>
    %111 = arith.divf %109, %110 : vector<32x1xf32>
    %112 = vector.broadcast %104 : vector<32x1xf32> to vector<32x32xf32>
    %113 = arith.subf %98, %112 : vector<32x32xf32>
    %cst_42 = arith.constant 9.99999974E-6 : f32
    %114 = vector.broadcast %cst_42 : f32 to vector<32x1xf32>
    %115 = arith.addf %111, %114 : vector<32x1xf32>
    %116 = math.rsqrt %115 : vector<32x1xf32>
    %117 = vector.broadcast %116 : vector<32x1xf32> to vector<32x32xf32>
    %118 = arith.mulf %113, %117 : vector<32x32xf32>
    %119 = vector.broadcast %99 : vector<1x32xf32> to vector<32x32xf32>
    %120 = arith.mulf %118, %119 : vector<32x32xf32>
    %121 = vector.broadcast %100 : vector<1x32xf32> to vector<32x32xf32>
    %122 = arith.addf %120, %121 : vector<32x32xf32>
    %c240 = arith.constant 240 : index
    %c0_43 = arith.constant 0 : index
    %123 = vector.load %arg3[%c240, %c0_43] : memref<496x128xbf16, #tpu.memory_space<vmem>>, vector<48x32xbf16>
    %cst_44 = arith.constant dense<0.000000e+00> : vector<32x32xf32>
    %124 = tpu.matmul %5, %123, %cst_44 {dimension_numbers = #tpu.dot_dimension_numbers<[1], [0], [0], [1], [0, 0, 1, 1], [], []>} : vector<32x48xbf16>, vector<48x32xbf16>, vector<32x32xf32> -> vector<32x32xf32>
    %cst_45 = arith.constant 1.000000e+00 : f32
    %125 = vector.broadcast %cst_45 : f32 to vector<32x32xf32>
    %126 = arith.addf %125, %124 : vector<32x32xf32>
    %127 = arith.mulf %122, %126 : vector<32x32xf32>
    %128 = arith.truncf %127 : vector<32x32xf32> to vector<32x32xbf16>
    %c288 = arith.constant 288 : index
    %c0_46 = arith.constant 0 : index
    %129 = vector.load %arg3[%c288, %c0_46] : memref<496x128xbf16, #tpu.memory_space<vmem>>, vector<32x128xbf16>
    %cst_47 = arith.constant dense<0.000000e+00> : vector<32x128xf32>
    %130 = tpu.matmul %128, %129, %cst_47 {dimension_numbers = #tpu.dot_dimension_numbers<[1], [0], [0], [1], [0, 0, 1, 1], [], []>} : vector<32x32xbf16>, vector<32x128xbf16>, vector<32x128xf32> -> vector<32x128xf32>
    %c9 = arith.constant 9 : index
    %c0_48 = arith.constant 0 : index
    %131 = vector.load %arg4[%c9, %c0_48] : memref<16x128xf32, #tpu.memory_space<vmem>>, vector<1x128xf32>
    %132 = vector.broadcast %131 : vector<1x128xf32> to vector<32x128xf32>
    %133 = arith.addf %130, %132 : vector<32x128xf32>
    %134 = arith.mulf %133, %133 : vector<32x128xf32>
    %135 = arith.mulf %133, %134 : vector<32x128xf32>
    %cst_49 = arith.constant 4.471500e-02 : f32
    %136 = vector.broadcast %cst_49 : f32 to vector<32x128xf32>
    %137 = arith.mulf %136, %135 : vector<32x128xf32>
    %138 = arith.addf %133, %137 : vector<32x128xf32>
    %cst_50 = arith.constant 0.797884583 : f32
    %139 = vector.broadcast %cst_50 : f32 to vector<32x128xf32>
    %140 = arith.mulf %139, %138 : vector<32x128xf32>
    %141 = math.tanh %140 : vector<32x128xf32>
    %cst_51 = arith.constant 1.000000e+00 : f32
    %142 = vector.broadcast %cst_51 : f32 to vector<32x128xf32>
    %143 = arith.addf %142, %141 : vector<32x128xf32>
    %cst_52 = arith.constant 5.000000e-01 : f32
    %144 = vector.broadcast %cst_52 : f32 to vector<32x128xf32>
    %145 = arith.mulf %144, %143 : vector<32x128xf32>
    %146 = arith.mulf %133, %145 : vector<32x128xf32>
    %c320 = arith.constant 320 : index
    %c0_53 = arith.constant 0 : index
    %147 = vector.load %arg3[%c320, %c0_53] : memref<496x128xbf16, #tpu.memory_space<vmem>>, vector<48x128xbf16>
    %cst_54 = arith.constant dense<0.000000e+00> : vector<32x128xf32>
    %148 = tpu.matmul %5, %147, %cst_54 {dimension_numbers = #tpu.dot_dimension_numbers<[1], [0], [0], [1], [0, 0, 1, 1], [], []>} : vector<32x48xbf16>, vector<48x128xbf16>, vector<32x128xf32> -> vector<32x128xf32>
    %cst_55 = arith.constant 1.000000e+00 : f32
    %149 = vector.broadcast %cst_55 : f32 to vector<32x128xf32>
    %150 = arith.addf %149, %148 : vector<32x128xf32>
    %151 = arith.mulf %146, %150 : vector<32x128xf32>
    %152 = arith.truncf %151 : vector<32x128xf32> to vector<32x128xbf16>
    %c368 = arith.constant 368 : index
    %c0_56 = arith.constant 0 : index
    %153 = vector.load %arg3[%c368, %c0_56] : memref<496x128xbf16, #tpu.memory_space<vmem>>, vector<128x32xbf16>
    %cst_57 = arith.constant dense<0.000000e+00> : vector<32x32xf32>
    %154 = tpu.matmul %152, %153, %cst_57 {dimension_numbers = #tpu.dot_dimension_numbers<[1], [0], [0], [1], [0, 0, 1, 1], [], []>} : vector<32x128xbf16>, vector<128x32xbf16>, vector<32x32xf32> -> vector<32x32xf32>
    %c10 = arith.constant 10 : index
    %c0_58 = arith.constant 0 : index
    %155 = vector.load %arg4[%c10, %c0_58] : memref<16x128xf32, #tpu.memory_space<vmem>>, vector<1x32xf32>
    %156 = vector.broadcast %155 : vector<1x32xf32> to vector<32x32xf32>
    %157 = arith.addf %154, %156 : vector<32x32xf32>
    %158 = arith.addf %98, %157 : vector<32x32xf32>
    %159 = vector.shape_cast %158 : vector<32x32xf32> to vector<4x8x32xf32>
    %c0_59 = arith.constant 0 : index
    %c0_60 = arith.constant 0 : index
    %c0_61 = arith.constant 0 : index
    %160 = vector.load %arg5[%c0_59, %c0_60, %c0_61] : memref<4x8x32xf32, #tpu.memory_space<vmem>>, vector<4x8x32xf32>
    tpu.vector_store %arg5[%c0_59, %c0_60, %c0_61], %159 {strides = array<i32>} : memref<4x8x32xf32, #tpu.memory_space<vmem>>, vector<4x8x32xf32>,
    return
  }
  func.func @transform_0(%arg0: i32) -> (i32, i32, i32) {
    %c0_i32 = arith.constant 0 : i32
    %c0_i32_0 = arith.constant 0 : i32
    %c0_i32_1 = arith.constant 0 : i32
    return %arg0, %c0_i32, %c0_i32_0 : i32, i32, i32
  }
  func.func @transform_1(%arg0: i32) -> (i32, i32, i32) {
    %c0_i32 = arith.constant 0 : i32
    %c0_i32_0 = arith.constant 0 : i32
    %c0_i32_1 = arith.constant 0 : i32
    return %arg0, %c0_i32, %c0_i32_0 : i32, i32, i32
  }
  func.func @transform_2(%arg0: i32) -> (i32, i32) {
    %c0_i32 = arith.constant 0 : i32
    %c0_i32_0 = arith.constant 0 : i32
    %c0_i32_1 = arith.constant 0 : i32
    return %c0_i32, %c0_i32_0 : i32, i32
  }
  func.func @transform_3(%arg0: i32) -> (i32, i32) {
    %c0_i32 = arith.constant 0 : i32
    %c0_i32_0 = arith.constant 0 : i32
    %c0_i32_1 = arith.constant 0 : i32
    return %c0_i32, %c0_i32_0 : i32, i32
  }
  func.func @transform_4(%arg0: i32) -> (i32, i32, i32) {
    %c0_i32 = arith.constant 0 : i32
    %c0_i32_0 = arith.constant 0 : i32
    %c0_i32_1 = arith.constant 0 : i32
    return %arg0, %c0_i32, %c0_i32_0 : i32, i32, i32
  }
}

</mosaic_0001>

<bundles_post_ra>
// kernel: mul.1
= control target key start
LH: loop header
LB: loop body
LE: loop exit
PB: predicated region body
PF: predicated region fallthrough
CT: control target
= control target key end

     0   :  { %s34_s0 = inlined_call_operand.vmem [shape: f32[1,32], index: 0, kind: input, shape index: {}]   ;;  %s35_s1 = inlined_call_operand.vmem [shape: f32[1,32], index: 1, kind: input, shape index: {}]   ;;  %s36_s2 = inlined_call_operand.vmem [shape: f32[1,32], index: 2, kind: output, shape index: {}]  }
   0x1   :  { %v3_v0 = vld [vmem:[%s34_s0] sm:$0x1] }
   0x2   :  { %v4_v1 = vld [vmem:[%s35_s1] sm:$0x1] }
   0x3   :  { %v7_v2 = vmul.f32 %v4_v1, %v3_v0 }
   0x5   :  { %9 = vst [vmem:[%s36_s2] sm:$0x1] %v7_v2 }

// kernel: attentive_read_in.1
= control target key start
LH: loop header
LB: loop body
LE: loop exit
PB: predicated region body
PF: predicated region fallthrough
CT: control target
= control target key end

     0   :  { %s2220_s15 = smov 0   ;;  %s2640_s0 = inlined_call_operand.vmem [shape: f32[8,8,48], index: 0, kind: input, shape index: {}]   ;;  %s2641_s1 = inlined_call_operand.vmem [shape: f32[8,16,24], index: 1, kind: input, shape index: {}]   ;;  %s2642_s2 = inlined_call_operand.vmem [shape: bf16[496,128], index: 2, kind: input, shape index: {}]   ;;  %s2643_s3 = inlined_call_operand.vmem [shape: f32[16,128], index: 3, kind: input, shape index: {}]   ;;  %s2644_s4 = inlined_call_operand.vmem [shape: f32[8,8,32], index: 4, kind: output, shape index: {}]  }
   0x1 LB: > { %s1789_s16 = sadd.s32 4294967295, %s2191_s15   ;;  %p1793_p0 = scmp.ge.s32.totalorder %s2191_s15, 1  ;;  %s2191_s15 = sphi %s2220_s15, %s14_s15  }
   0x2   : > { %p175_p1 = scmp.lt.s32.totalorder %s2191_s15, 3 }
   0x4   : > { %p176_p2 = pnand %p1793_p0, %p175_p1 }
   0x5   : > { %s1794_s17 = sshll.u32 (!%p176_p2), %s1789_s16, 2  ;;  %v2098_v0 = vld [vmem:[%s2642_s2] sm:$0xff] (!%p176_p2)   ;;  %v2099_v1 = vld [vmem:[%s2642_s2 + $0x8] sm:$0xff] (!%p176_p2)   ;;  %vm395_vm0 = vcmask (!%p176_p2), 195584   ;;  %vm323_vm1 = vcmask (!%p176_p2), 261120   ;;  %v2100_v2 = vld [vmem:[%s2642_s2 + $0x10] sm:$0xff] (!%p176_p2)  }
   0x6   : > { %179 = sbr.rel (%p176_p2) target bundleno = 2335 (0x91f), region = 36  ;;  %p208_p3 = scmp.lt.s32.totalorder (!%p176_p2), %s1794_s17, 7  ;;  %1941 = vmatprep.subr.bf16.mxu0 (!%p176_p2), %v2098_v0  ;;  %vm265_vm2 = vcmask (!%p176_p2), 392192   ;;  %vm640_vm3 = vcmask (!%p176_p2), 1043456   ;;  %vm2194_vm4 = vmmov (!%p176_p2), 0   ;;  %vm725_vm5 = vcmask (!%p176_p2), 523264  }
   0x7   : > { %1942 = vmatpush3.bf16.msra.mxu0 (!%p176_p2), %v2098_v0  ;;  %vm910_vm6 = vcmask (!%p176_p2), 130048  }
   0x8   : > { %1943 = vmatprep.subr.bf16.mxu0 (!%p176_p2), %v2099_v1 }
   0xb   : > { %1944 = vmatpush3.bf16.msra.mxu0 (!%p176_p2), %v2099_v1 }
   0xc   : > { %1945 = vmatprep.subr.bf16.mxu0 (!%p176_p2), %v2100_v2 }
   0xd   : > { %s2646_s17 = smov (!%p208_p3, %s1794_s17), 7 }
   0xe   : > { %s1871_s24 = sshll.u32 %s2646_s17, 4  ;;  %s1795_s25 = sshll.u32 %s2646_s17, 3 }
   0xf   : > { %s218_s28 = scalar_lea.vmem %s2641_s1, %s1871_s24  ;;  %s211_s5 = scalar_lea.vmem %s2640_s0, %s1795_s25  ;;  %1946 = vmatpush3.bf16.msra.mxu0 %v2100_v2 }
  0x10   : > { %v231_v3 = vld [vmem:[%s218_s28] sm:$0xff]  ;;  %v233_v4 = vld [vmem:[%s218_s28 + $0x10] sm:$0xff]  ;;  %v232_v5 = vld [vmem:[%s218_s28 + $0x8] sm:$0xff]  ;;  %s224_s19 = scalar_lea.vmem %s2644_s4, %s1795_s25 }
  0x11   : > { %v396_v6 = vsel %vm395_vm0, %v231_v3, 0.0  ;;  %v402_v7 = vsel %vm395_vm0, %v233_v4, 0.0  ;;  %v234_v8 = vld [vmem:[%s218_s28 + $0x18] sm:$0xff]  ;;  %v227_v9 = vld [vmem:[%s211_s5] sm:$0xff]  ;;  %v228_v10 = vld [vmem:[%s211_s5 + $0x8] sm:$0xff]  ;;  %v399_v11 = vsel %vm395_vm0, %v232_v5, 0.0 }
  0x12   : > { %397 = vadd.xlane.f32.xlu0 %v396_v6  ;;  %403 = vadd.xlane.f32.xlu1 %v402_v7  ;;  %v405_v12 = vsel %vm395_vm0, %v234_v8, 0.0  ;;  %v324_v13 = vsel %vm323_vm1, %v227_v9, 0.0  ;;  %v2254_v14 = vld [vmem:[%s211_s5 + $0x10] sm:$0xff]  ;;  %v2256_v15 = vld [vmem:[%s211_s5 + $0x18] sm:$0xff]  ;;  %v2258_v16 = vld [vmem:[%s218_s28 + $0x20] sm:$0xff]  ;;  %v2260_v17 = vpack.c.bf16 %v228_v10, %v227_v9  ;;  %v327_v18 = vsel %vm323_vm1, %v228_v10, 0.0 }
  0x13   : > { %v330_v19 = vsel %vm323_vm1, %v2254_v14, 0.0  ;;  %v2267_v20 = vpack.c.bf16 %v2256_v15, %v2254_v14  ;;  %v333_v21 = vsel %vm323_vm1, %v2256_v15, 0.0  ;;  %v2271_v22 = vld [vmem:[%s218_s28 + $0x28] sm:$0xff]  ;;  %v2273_v23 = vld [vmem:[%s218_s28 + $0x30] sm:$0xff]  ;;  %v2275_v24 = vld [vmem:[%s218_s28 + $0x38] sm:$0xff]  ;;  %v408_v25 = vsel %vm395_vm0, %v2258_v16, 0.0 }
  0x14   : > { %v411_v26 = vsel %vm395_vm0, %v2271_v22, 0.0  ;;  %v414_v27 = vsel %vm395_vm0, %v2273_v23, 0.0  ;;  %v417_v28 = vsel %vm395_vm0, %v2275_v24, 0.0  ;;  %1947 = vmatprep.mubr.msk.bf16.mxu0 %vm265_vm2, %v2260_v17 }
  0x15   : > { %1948 = vmatmul.mubr.msk.bf16.vlgmr.msra.gmra.mrb[0].mxu0 %vm265_vm2, %v2267_v20 }
  0x16   : > { %400 = vadd.xlane.f32.xlu0 %v399_v11  ;;  %406 = vadd.xlane.f32.xlu1 %v405_v12 }
  0x1a   : > { %325 = vadd.xlane.f32.xlu0 %v324_v13  ;;  %328 = vadd.xlane.f32.xlu1 %v327_v18 }
  0x1e   : > { %331 = vadd.xlane.f32.xlu0 %v330_v19  ;;  %334 = vadd.xlane.f32.xlu1 %v333_v21 }
  0x22   : > { %409 = vadd.xlane.f32.xlu0 %v408_v25  ;;  %412 = vadd.xlane.f32.xlu1 %v411_v26 }
  0x26   : > { %415 = vadd.xlane.f32.xlu0 %v414_v27  ;;  %418 = vadd.xlane.f32.xlu1 %v417_v28  ;;  %v2102_v28 = vld [vmem:[%s2642_s2 + $0x30] ss:$0 sps:$4 sm:$0xff]  }
  0x9f   : > { %v398_v29 = vpop.xlane.xlu0 %397  ;;  %v404_v30 = vpop.xlane.xlu1 %403 }
  0xa0   : > { %v421_v31 = vmul.f32 0.041666668, %v398_v29  ;;  %v423_v32 = vmul.f32 0.041666668, %v404_v30  ;;  %v642_v29 = vsel %vm640_vm3, %v2102_v28, 0  ;;  %v2103_v30 = vld [vmem:[%s2642_s2 + $0x18] sm:$0xff]  }
  0xa1   : > { %1951 = vmatprep.subr.bf16.mxu1 %v2103_v30 }
  0xa2   : > { %v2289_v33 = vsub.f32 %v231_v3, %v421_v31  ;;  %v2291_v34 = vsub.f32 %v233_v4, %v423_v32  ;;  %1952 = vmatpush3.bf16.msra.mxu1 %v2103_v30  ;;  %v2104_v31 = vld [vmem:[%s2642_s2 + $0x20] sm:$0xff]  }
  0xa3   : > { %v401_v35 = vpop.xlane.xlu0 %400  ;;  %v407_v36 = vpop.xlane.xlu1 %406  ;;  %1953 = vmatprep.subr.bf16.mxu1 %v2104_v31 }
  0xa4   : > { %v422_v37 = vmul.f32 0.041666668, %v401_v35  ;;  %v424_v38 = vmul.f32 0.041666668, %v407_v36  ;;  %v437_v39 = vmul.f32 %v2289_v33, %v2289_v33  ;;  %v439_v40 = vmul.f32 %v2291_v34, %v2291_v34 }
  0xa6   : > { %v2297_v41 = vsub.f32 %v232_v5, %v422_v37  ;;  %v2299_v42 = vsub.f32 %v234_v8, %v424_v38  ;;  %v445_v43 = vsel %vm395_vm0, %v437_v39, 0.0  ;;  %v451_v46 = vsel %vm395_vm0, %v439_v40, 0.0  ;;  %1954 = vmatpush3.bf16.msra.mxu1 %v2104_v31  ;;  %v1806_v31 = vld [vmem:[%s2643_s3] ss:$0 sm:$0xff] }
  0xa7   : > { %446 = vadd.xlane.f32.xlu0 %v445_v43  ;;  %v326_v44 = vpop.xlane.xlu0 %325  ;;  %v329_v45 = vpop.xlane.xlu1 %328 }
  0xa8   : > { %v337_v47 = vmul.f32 0.03125, %v326_v44  ;;  %v438_v48 = vmul.f32 %v2297_v41, %v2297_v41  ;;  %v338_v49 = vmul.f32 0.03125, %v329_v45  ;;  %v440_v50 = vmul.f32 %v2299_v42, %v2299_v42 }
  0xaa   : > { %v2307_v51 = vsub.f32 %v227_v9, %v337_v47  ;;  %v448_v52 = vsel %vm395_vm0, %v438_v48, 0.0  ;;  %v2310_v53 = vsub.f32 %v228_v10, %v338_v49  ;;  %v454_v55 = vsel %vm395_vm0, %v440_v50, 0.0 }
  0xab   : > { %449 = vadd.xlane.f32.xlu1 %v448_v52  ;;  %452 = vadd.xlane.f32.xlu0 %v451_v46  ;;  %v332_v54 = vpop.xlane.xlu0 %331  ;;  %v335_v56 = vpop.xlane.xlu1 %334 }
  0xac   : > { %v339_v57 = vmul.f32 0.03125, %v332_v54  ;;  %v340_v58 = vmul.f32 0.03125, %v335_v56  ;;  %v345_v59 = vmul.f32 %v2307_v51, %v2307_v51  ;;  %v346_v60 = vmul.f32 %v2310_v53, %v2310_v53 }
  0xae   : > { %v2318_v61 = vsub.f32 %v2254_v14, %v339_v57  ;;  %v2321_v62 = vsub.f32 %v2256_v15, %v340_v58  ;;  %v349_v63 = vsel %vm323_vm1, %v345_v59, 0.0  ;;  %v352_v1 = vsel %vm323_vm1, %v346_v60, 0.0 }
  0xaf   : > { %455 = vadd.xlane.f32.xlu1 %v454_v55  ;;  %350 = vadd.xlane.f32.xlu0 %v349_v63  ;;  %v410_v0 = vpop.xlane.xlu0 %409  ;;  %v413_v2 = vpop.xlane.xlu1 %412 }
  0xb0   : > { %v425_v3 = vmul.f32 0.041666668, %v410_v0  ;;  %v426_v4 = vmul.f32 0.041666668, %v413_v2  ;;  %v347_v5 = vmul.f32 %v2318_v61, %v2318_v61  ;;  %v348_v6 = vmul.f32 %v2321_v62, %v2321_v62 }
  0xb2   : > { %v2330_v7 = vsub.f32 %v2258_v16, %v425_v3  ;;  %v2333_v8 = vsub.f32 %v2271_v22, %v426_v4  ;;  %v355_v9 = vsel %vm323_vm1, %v347_v5, 0.0  ;;  %v358_v11 = vsel %vm323_vm1, %v348_v6, 0.0  ;;  %v2379_v5 = vld [vmem:[%s2643_s3 + $0x2] ss:$0 sm:$0xff] }
  0xb3   : > { %353 = vadd.xlane.f32.xlu1 %v352_v1  ;;  %356 = vadd.xlane.f32.xlu0 %v355_v9  ;;  %v416_v10 = vpop.xlane.xlu0 %415  ;;  %v419_v12 = vpop.xlane.xlu1 %418 }
  0xb4   : > { %v427_v13 = vmul.f32 0.041666668, %v416_v10  ;;  %v428_v14 = vmul.f32 0.041666668, %v419_v12  ;;  %v441_v15 = vmul.f32 %v2330_v7, %v2330_v7  ;;  %v442_v16 = vmul.f32 %v2333_v8, %v2333_v8 }
  0xb6   : > { %v2342_v18 = vsub.f32 %v2273_v23, %v427_v13  ;;  %v2345_v19 = vsub.f32 %v2275_v24, %v428_v14  ;;  %v457_v21 = vsel %vm395_vm0, %v441_v15, 0.0  ;;  %v460_v22 = vsel %vm395_vm0, %v442_v16, 0.0  ;;  %v2101_v24 = vld [vmem:[%s2642_s2 + $0x28] sm:$0xff]  }
  0xb7   : > { %359 = vadd.xlane.f32.xlu1 %v358_v11  ;;  %458 = vadd.xlane.f32.xlu0 %v457_v21 }
  0xb8   : > { %v443_v25 = vmul.f32 %v2342_v18, %v2342_v18  ;;  %v444_v26 = vmul.f32 %v2345_v19, %v2345_v19  ;;  %1959 = vmatprep.subr.bf16.mxu0 %v2101_v24 }
  0xb9   : > { %1960 = vmatpush3.bf16.msra.mxu0 %v2101_v24 }
  0xba   : > { %v463_v27 = vsel %vm395_vm0, %v443_v25, 0.0  ;;  %v466_v23 = vsel %vm395_vm0, %v444_v26, 0.0  ;;  %2087 = vmatprep.subr.msk.bf16.mxu0 %vm640_vm3, %v2102_v28  ;;  %v2387_v26 = vld [vmem:[%s2643_s3 + $0x3] ss:$0 sm:$0xff] }
  0xbb   : > { %461 = vadd.xlane.f32.xlu1 %v460_v22  ;;  %464 = vadd.xlane.f32.xlu0 %v463_v27 }
  0xbd   : > { %1962 = vmatpush3.bf16.msra.mxu0 %v642_v29 }
  0xbf   : > { %467 = vadd.xlane.f32.xlu1 %v466_v23 }
  0xe8   : > { %v2367_v32 = vpop.f32.mrb[0].mxu0 }
  0xe9   : > { %v2369_v35 = vpop.f32.mrb[1].mxu0 }
  0xea   : > { %v2371_v36 = vpop.f32.mrb[2].mxu0 }
  0xeb   : > { %v2373_v37 = vpop.f32.mrb[3].mxu0 }
 0x134   : > { %v447_v38 = vpop.xlane.xlu0 %446 }
 0x135   : > { %v469_v39 = vmul.f32 0.041666668, %v447_v38 }
 0x137   : > { %v477_v40 = vadd.f32 1e-05, %v469_v39 }
 0x138   : > { %v450_v43 = vpop.xlane.xlu1 %449  ;;  %v453_v44 = vpop.xlane.xlu0 %452 }
 0x139   : > { %2129 = vrsqrt.f32 %v477_v40  ;;  %v470_v45 = vmul.f32 0.041666668, %v450_v43  ;;  %v471_v46 = vmul.f32 0.041666668, %v453_v44 }
 0x13b   : > { %v478_v47 = vadd.f32 1e-05, %v470_v45  ;;  %v479_v48 = vadd.f32 1e-05, %v471_v46 }
 0x13c   : > { %v456_v49 = vpop.xlane.xlu1 %455  ;;  %v351_v50 = vpop.xlane.xlu0 %350 }
 0x13d   : > { %2131 = vrsqrt.f32 %v478_v47  ;;  %v472_v52 = vmul.f32 0.041666668, %v456_v49  ;;  %v361_v54 = vmul.f32 0.03125, %v351_v50 }
 0x13e   : > { %2133 = vrsqrt.f32 %v479_v48 }
 0x13f   : > { %v480_v55 = vadd.f32 1e-05, %v472_v52  ;;  %v365_v56 = vadd.f32 1e-05, %v361_v54 }
 0x140   : > { %v354_v57 = vpop.xlane.xlu1 %353  ;;  %v357_v58 = vpop.xlane.xlu0 %356 }
 0x141   : > { %2135 = vrsqrt.f32 %v480_v55  ;;  %v362_v59 = vmul.f32 0.03125, %v354_v57  ;;  %v363_v60 = vmul.f32 0.03125, %v357_v58  ;;  %v2408_v55 = vadd.f32 1.0, %v2369_v35 }
 0x142   : > { %2137 = vrsqrt.f32 %v365_v56  ;;  %v2411_v57 = vadd.f32 1.0, %v2373_v37 }
 0x143   : > { %v2130_v63 = vpop.eup %2129  ;;  %v366_v0 = vadd.f32 1e-05, %v362_v59  ;;  %v367_v1 = vadd.f32 1e-05, %v363_v60 }
 0x144   : > { %v493_v2 = vmul.f32 %v2130_v63, %v2289_v33  ;;  %v360_v3 = vpop.xlane.xlu1 %359  ;;  %v459_v4 = vpop.xlane.xlu0 %458 }
 0x145   : > { %2139 = vrsqrt.f32 %v366_v0  ;;  %v364_v6 = vmul.f32 0.03125, %v360_v3  ;;  %v473_v9 = vmul.f32 0.041666668, %v459_v4 }
 0x146   : > { %2141 = vrsqrt.f32 %v367_v1  ;;  %v505_v33 = vmul.f32 %v2379_v5, %v493_v2 }
 0x147   : > { %v2132_v10 = vpop.eup %2131  ;;  %v368_v11 = vadd.f32 1e-05, %v364_v6  ;;  %v481_v12 = vadd.f32 1e-05, %v473_v9 }
 0x148   : > { %v2134_v13 = vpop.eup %2133  ;;  %v494_v14 = vmul.f32 %v2132_v10, %v2297_v41  ;;  %v462_v15 = vpop.xlane.xlu1 %461  ;;  %v517_v38 = vadd.f32 %v2387_v26, %v505_v33 }
 0x149   : > { %v465_v16 = vpop.xlane.xlu0 %464  ;;  %v495_v21 = vmul.f32 %v2134_v13, %v2291_v34  ;;  %2143 = vrsqrt.f32 %v368_v11  ;;  %v474_v22 = vmul.f32 0.041666668, %v462_v15  ;;  %v2424_v11 = vadd.f32 1.0, %v2371_v36 }
 0x14a   : > { %v475_v25 = vmul.f32 0.041666668, %v465_v16  ;;  %2145 = vrsqrt.f32 %v481_v12  ;;  %v506_v27 = vmul.f32 %v2379_v5, %v494_v14 }
 0x14b   : > { %v2136_v23 = vpop.eup %2135  ;;  %v482_v24 = vadd.f32 1e-05, %v474_v22  ;;  %v507_v29 = vmul.f32 %v2379_v5, %v495_v21 }
 0x14c   : > { %v483_v41 = vadd.f32 1e-05, %v475_v25  ;;  %v2138_v28 = vpop.eup %2137  ;;  %v496_v30 = vmul.f32 %v2136_v23, %v2299_v42  ;;  %v468_v34 = vpop.xlane.xlu1 %467  ;;  %v518_v39 = vadd.f32 %v2387_v26, %v506_v27  ;;  %v1807_v42 = vld [vmem:[%s2643_s3 + $0x1] ss:$0 sm:$0xff] }
 0x14d   : > { %2147 = vrsqrt.f32 %v482_v24  ;;  %v476_v40 = vmul.f32 0.041666668, %v468_v34  ;;  %v373_v43 = vmul.f32 %v2138_v28, %v2307_v51  ;;  %v519_v52 = vadd.f32 %v2387_v26, %v507_v29 }
 0x14e   : > { %v508_v44 = vmul.f32 %v2379_v5, %v496_v30  ;;  %2149 = vrsqrt.f32 %v483_v41  ;;  %v607_v45 = vpack.c.bf16 %v518_v39, %v517_v38 }
 0x14f   : > { %v2140_v46 = vpop.eup %2139  ;;  %v484_v47 = vadd.f32 1e-05, %v476_v40  ;;  %v381_v48 = vmul.f32 %v1806_v31, %v373_v43 }
 0x150   : > { %v2142_v49 = vpop.eup %2141  ;;  %1963 = vmatprep.mubr.msk.bf16.mxu0 %vm395_vm0, %v607_v45  ;;  %v374_v50 = vmul.f32 %v2140_v46, %v2310_v53  ;;  %v520_v51 = vadd.f32 %v2387_v26, %v508_v44  ;;  %v1810_v44 = vld [vmem:[%s2643_s3 + $0x4] ss:$0 sm:$0xff] }
 0x151   : > { %2151 = vrsqrt.f32 %v484_v47  ;;  %v375_v54 = vmul.f32 %v2142_v49, %v2318_v61  ;;  %v389_v56 = vadd.f32 %v1807_v42, %v381_v48  ;;  %v2417_v61 = vadd.f32 1.0, %v2367_v32 }
 0x152   : > { %v382_v58 = vmul.f32 %v1806_v31, %v374_v50  ;;  %v608_v59 = vpack.c.bf16 %v520_v51, %v519_v52 }
 0x153   : > { %v2144_v60 = vpop.eup %2143  ;;  %v383_v63 = vmul.f32 %v1806_v31, %v375_v54  ;;  %v525_v3 = vmul.f32 %v389_v56, %v2408_v55 }
 0x154   : > { %v2146_v0 = vpop.eup %2145  ;;  %v376_v53 = vmul.f32 %v2144_v60, %v2321_v62  ;;  %v390_v1 = vadd.f32 %v1807_v42, %v382_v58  ;;  %1964 = vmatmul.mubr.msk.bf16.vlgmr.msra.gmra.mrb[4].mxu0 %vm395_vm0, %v608_v59 }
 0x155   : > { %v497_v2 = vmul.f32 %v2146_v0, %v2330_v7  ;;  %v391_v35 = vadd.f32 %v1807_v42, %v383_v63 }
 0x156   : > { %v384_v37 = vmul.f32 %v1806_v31, %v376_v53  ;;  %v526_v4 = vmul.f32 %v390_v1, %v2411_v57 }
 0x157   : > { %v2148_v6 = vpop.eup %2147  ;;  %v509_v9 = vmul.f32 %v2379_v5, %v497_v2  ;;  %v527_v13 = vmul.f32 %v391_v35, %v2417_v61 }
 0x158   : > { %v2150_v10 = vpop.eup %2149  ;;  %v498_v62 = vmul.f32 %v2148_v6, %v2333_v8  ;;  %v392_v12 = vadd.f32 %v1807_v42, %v384_v37  ;;  %v529_v7 = vpack.c.bf16 %v526_v4, %v525_v3 }
 0x159   : > { %v499_v32 = vmul.f32 %v2150_v10, %v2342_v18  ;;  %v521_v33 = vadd.f32 %v2387_v26, %v509_v9 }
 0x15a   : > { %v528_v14 = vmul.f32 %v392_v12, %v2424_v11  ;;  %1955 = vmatprep.mubr.msk.bf16.mxu1 %vm323_vm1, %v529_v7  ;;  %v510_v15 = vmul.f32 %v2379_v5, %v498_v62 }
 0x15b   : > { %v2152_v16 = vpop.eup %2151  ;;  %v511_v22 = vmul.f32 %v2379_v5, %v499_v32 }
 0x15c   : > { %v500_v8 = vmul.f32 %v2152_v16, %v2345_v19  ;;  %v530_v21 = vpack.c.bf16 %v528_v14, %v527_v13  ;;  %v522_v36 = vadd.f32 %v2387_v26, %v510_v15  ;;  %v2193_v19 = vmov 0.0  }
 0x15d   : > { %v523_v27 = vadd.f32 %v2387_v26, %v511_v22  ;;  %1971 = vmatprep.subr.bf16.mxu0 %v2193_v19  ;;  %1983 = vmatprep.subr.bf16.mxu1 %v2193_v19 }
 0x15e   : > { %1956 = vmatmul.mubr.msk.bf16.vlgmr.msra.gmra.mrb[0].mxu1 %vm323_vm1, %v530_v21  ;;  %v609_v18 = vpack.c.bf16 %v522_v36, %v521_v33  ;;  %v512_v25 = vmul.f32 %v2379_v5, %v500_v8 }
 0x15f   : > { %1985 = vmatprep.mubr.msk.bf16.mxu1 %vm2194_vm4, %v2193_v19 }
 0x160   : > { %1967 = vmatprep.mubr.msk.bf16.mxu0 %vm395_vm0, %v609_v18  ;;  %v524_v23 = vadd.f32 %v2387_v26, %v512_v25  ;;  %v1815_v26 = vld [vmem:[%s2643_s3 + $0x5] ss:$0 sm:$0xff] }
 0x162   : > { %v610_v24 = vpack.c.bf16 %v524_v23, %v523_v27 }
 0x164   : > { %1968 = vmatmul.mubr.msk.bf16.gmra.mrb[8].mxu0 %vm395_vm0, %v610_v24 }
 0x165   : > { %1973 = vmatprep.mubr.msk.bf16.mxu0 %vm2194_vm4, %v2193_v19 }
 0x227   : > { %v1965_v5 = vpop.f32.mrb[4].mxu0 }
 0x228   : > { %v678_v41 = vpop.f32.mrb[5].mxu0  ;;  %v687_v29 = vadd.f32 %v1965_v5, %v1815_v26 }
 0x229   : > { %v1966_v28 = vpop.f32.mrb[6].mxu0  ;;  %v679_v31 = vadd.f32 %v1815_v26, %v678_v41 }
 0x22a   : > { %v690_v30 = vadd.f32 %v1966_v28, %v1815_v26  ;;  %v681_v34 = vpop.f32.mrb[7].mxu0 }
 0x22b   : > { %v682_v38 = vadd.f32 %v1815_v26, %v681_v34 }
 0x22c   : > { %v710_v39 = vpack.c.bf16 %v690_v30, %v687_v29 }
 0x22d   : > { %v709_v40 = vpack.c.bf16 %v682_v38, %v679_v31 }
 0x22e   : > { %v776_v52 = vsel %vm725_vm5, %v710_v39, 0 }
 0x22f   : > { %v730_v43 = vsel %vm725_vm5, %v709_v40, 0 }
 0x230   : > { %1972 = vmatpush3.bf16.xpose.msra.mxu0 %v730_v43 }
 0x231   : > { %v1957_v45 = vpop.f32.mrb[0].mxu1  ;;  %1977 = vmatprep.subr.bf16.mxu0 %v2193_v19 }
 0x232   : > { %v592_v46 = vpop.f32.mrb[1].mxu1  ;;  %v601_v37 = vadd.f32 %v1957_v45, %v1810_v44 }
 0x233   : > { %v593_v47 = vadd.f32 %v1810_v44, %v592_v46  ;;  %v1958_v42 = vpop.f32.mrb[2].mxu1 }
 0x234   : > { %v595_v48 = vpop.f32.mrb[3].mxu1  ;;  %v604_v4 = vadd.f32 %v1958_v42, %v1810_v44  ;;  %v1874_v6 = vpack.c.bf16 %v601_v37, %v601_v37 }
 0x235   : > { %v1872_v49 = vpack.c.bf16 %v593_v47, %v593_v47  ;;  %v596_v54 = vadd.f32 %v1810_v44, %v595_v48 }
 0x236   : > { %v1875_v9 = vpack.c.bf16 %v604_v4, %v604_v4 }
 0x237   : > { %v1969_v50 = vpop.f32.mrb[8].mxu0  ;;  %1974 = vmatmul.mubr.msk.bf16.vlgmr.msra.gmra.mrb[12].mxu0 %vm725_vm5, %v1872_v49  ;;  %v1873_v1 = vpack.c.bf16 %v596_v54, %v596_v54 }
 0x238   : > { %v694_v51 = vpop.f32.mrb[9].mxu0  ;;  %1978 = vmatpush3.bf16.xpose.msra.mxu0 %v776_v52  ;;  %1979 = vmatprep.mubr.msk.bf16.mxu0 %vm2194_vm4, %v2193_v19  ;;  %v703_v58 = vadd.f32 %v1969_v50, %v1815_v26 }
 0x239   : > { %v1970_v56 = vpop.f32.mrb[10].mxu0  ;;  %1989 = vmatprep.subr.bf16.mxu0 %v2193_v19  ;;  %v695_v63 = vadd.f32 %v1815_v26, %v694_v51 }
 0x23a   : > { %v706_v59 = vadd.f32 %v1970_v56, %v1815_v26  ;;  %v697_v60 = vpop.f32.mrb[11].mxu0 }
 0x23b   : > { %v698_v0 = vadd.f32 %v1815_v26, %v697_v60  ;;  %v2105_v60 = vld [vmem:[%s2642_s2 + $0x38] sm:$0xff]  }
 0x23c   : > { %v2460_v53 = vpack.c.bf16 %v706_v59, %v703_v58 }
 0x23d   : > { %v2462_v2 = vpack.c.bf16 %v698_v0, %v695_v63 }
 0x23e   : > { %v868_v35 = vsel %vm725_vm5, %v2460_v53, 0 }
 0x23f   : > { %1980 = vmatmul.mubr.msk.bf16.vlgmr.msra.gmra.mrb[16].mxu0 %vm725_vm5, %v1873_v1  ;;  %v822_v3 = vsel %vm725_vm5, %v2462_v2, 0 }
 0x240   : > { %1984 = vmatpush3.bf16.xpose.msra.mxu1 %v822_v3  ;;  %1990 = vmatpush3.bf16.xpose.msra.mxu0 %v868_v35 }
 0x241   : > { %1991 = vmatprep.mubr.msk.bf16.mxu0 %vm2194_vm4, %v2193_v19  ;;  %1995 = vmatprep.subr.bf16.mxu1 %v2193_v19 }
 0x242   : > { %2001 = vmatprep.subr.bf16.mxu0 %v2193_v19 }
 0x247   : > { %1986 = vmatmul.mubr.msk.bf16.vlgmr.msra.gmra.mrb[4].mxu1 %vm725_vm5, %v1874_v6  ;;  %1992 = vmatmul.mubr.msk.bf16.vlgmr.msra.gmra.mrb[20].mxu0 %vm725_vm5, %v1875_v9 }
 0x248   : > { %1996 = vmatpush3.bf16.msra.mxu1 %v709_v40  ;;  %2002 = vmatpush3.bf16.msra.mxu0 %v710_v39 }
 0x249   : > { %1997 = vmatprep.mubr.msk.bf16.mxu1 %vm2194_vm4, %v2193_v19  ;;  %2007 = vmatprep.subr.bf16.mxu1 %v2193_v19 }
 0x24a   : > { %2003 = vmatprep.mubr.msk.bf16.mxu0 %vm2194_vm4, %v2193_v19  ;;  %2013 = vmatprep.subr.bf16.mxu0 %v2193_v19 }
 0x30a   : > { %v766_v10 = vpop.f32.mrb[12].mxu0 }
 0x30b   : > { %v1975_v62 = vpop.f32.mrb[13].mxu0  ;;  %v911_v12 = vsel %vm910_vm6, %v766_v10, -inf }
 0x30c   : > { %912 = vmax.xlane.f32.xlu0 %v911_v12  ;;  %v769_v7 = vpop.f32.mrb[14].mxu0  ;;  %v2109_v12 = vld [vmem:[%s2642_s2 + $0x58] sm:$0xff]  }
 0x30d   : > { %v1976_v32 = vpop.f32.mrb[15].mxu0  ;;  %v2110_v7 = vld [vmem:[%s2642_s2 + $0x60] sm:$0xff]  }
 0x30e   : > { %v2111_v32 = vld [vmem:[%s2642_s2 + $0x68] sm:$0xff]  }
 0x312   : > { %v812_v13 = vpop.f32.mrb[16].mxu0 }
 0x313   : > { %v1981_v14 = vpop.f32.mrb[17].mxu0  ;;  %v914_v15 = vsel %vm910_vm6, %v812_v13, -inf }
 0x314   : > { %915 = vmax.xlane.f32.xlu1 %v914_v15  ;;  %v815_v16 = vpop.f32.mrb[18].mxu0 }
 0x315   : > { %v1982_v33 = vpop.f32.mrb[19].mxu0 }
 0x31a   : > { %v858_v8 = vpop.f32.mrb[4].mxu1  ;;  %v904_v21 = vpop.f32.mrb[20].mxu0 }
 0x31b   : > { %v1987_v36 = vpop.f32.mrb[5].mxu1  ;;  %v1993_v22 = vpop.f32.mrb[21].mxu0  ;;  %v917_v18 = vsel %vm910_vm6, %v858_v8, -inf  ;;  %v920_v25 = vsel %vm910_vm6, %v904_v21, -inf }
 0x31c   : > { %v861_v27 = vpop.f32.mrb[6].mxu1  ;;  %918 = vmax.xlane.f32.xlu0 %v917_v18  ;;  %921 = vmax.xlane.f32.xlu1 %v920_v25  ;;  %v907_v23 = vpop.f32.mrb[22].mxu0 }
 0x31d   : > { %v1988_v24 = vpop.f32.mrb[7].mxu1  ;;  %v1994_v5 = vpop.f32.mrb[23].mxu0 }
 0x399   : > { %v913_v26 = vpop.xlane.xlu0 %912 }
 0x39a   : > { %v923_v41 = vsub.f32 %v766_v10, %v913_v26  ;;  %v2106_v10 = vld [vmem:[%s2642_s2 + $0x40] sm:$0xff]  }
 0x39c   : > { %v927_v28 = vmul.f32 1.442695, %v923_v41 }
 0x39e   : > { %2153 = vpow2.f32 %v927_v28 }
 0x3a1   : > { %v916_v29 = vpop.xlane.xlu1 %915 }
 0x3a2   : > { %v924_v30 = vsub.f32 %v812_v13, %v916_v29  ;;  %v2112_v13 = vld [vmem:[%s2642_s2 + $0x70] sm:$0xff]  }
 0x3a4   : > { %v929_v34 = vmul.f32 1.442695, %v924_v30 }
 0x3a6   : > { %2155 = vpow2.f32 %v929_v34 }
 0x3a8   : > { %v2154_v31 = vpop.eup %2153 }
 0x3a9   : > { %v919_v38 = vpop.xlane.xlu0 %918  ;;  %v922_v39 = vpop.xlane.xlu1 %921  ;;  %v935_v40 = vsel %vm910_vm6, %v2154_v31, 0.0 }
 0x3aa   : > { %v925_v43 = vsub.f32 %v858_v8, %v919_v38  ;;  %v926_v44 = vsub.f32 %v904_v21, %v922_v39  ;;  %936 = vadd.xlane.f32.xlu0 %v935_v40  ;;  %v2114_v38 = vld [vmem:[%s2642_s2 + $0x80] sm:$0xff]  }
 0x3ac   : > { %v931_v45 = vmul.f32 1.442695, %v925_v43  ;;  %v933_v46 = vmul.f32 1.442695, %v926_v44 }
 0x3ae   : > { %2157 = vpow2.f32 %v931_v45 }
 0x3af   : > { %2159 = vpow2.f32 %v933_v46 }
 0x3b0   : > { %v2156_v47 = vpop.eup %2155 }
 0x3b1   : > { %v938_v42 = vsel %vm910_vm6, %v2156_v47, 0.0 }
 0x3b2   : > { %939 = vadd.xlane.f32.xlu1 %v938_v42 }
 0x3b8   : > { %v2158_v48 = vpop.eup %2157 }
 0x3b9   : > { %v2160_v49 = vpop.eup %2159  ;;  %v941_v50 = vsel %vm910_vm6, %v2158_v48, 0.0 }
 0x3ba   : > { %942 = vadd.xlane.f32.xlu0 %v941_v50  ;;  %v944_v52 = vsel %vm910_vm6, %v2160_v49, 0.0 }
 0x3bb   : > { %945 = vadd.xlane.f32.xlu1 %v944_v52 }
 0x437   : > { %v937_v51 = vpop.xlane.xlu0 %936 }
 0x438   : > { %2161 = vrcp.f32 %v937_v51 }
 0x43f   : > { %v940_v54 = vpop.xlane.xlu1 %939 }
 0x440   : > { %2163 = vrcp.f32 %v940_v54 }
 0x442   : > { %v2162_v56 = vpop.eup %2161 }
 0x443   : > { %v951_v58 = vmul.f32 %v2162_v56, %v2154_v31 }
 0x445   : > { %v955_v59 = vpack.c.bf16 %v951_v58, %v951_v58 }
 0x447   : > { %1998 = vmatmul.mubr.msk.bf16.vlgmr.msra.gmra.mrb[8].mxu1 %vm910_vm6, %v955_v59  ;;  %v943_v63 = vpop.xlane.xlu0 %942 }
 0x448   : > { %2008 = vmatpush3.bf16.msra.mxu1 %v2462_v2  ;;  %2165 = vrcp.f32 %v943_v63  ;;  %v946_v0 = vpop.xlane.xlu1 %945  ;;  %2009 = vmatprep.mubr.msk.bf16.mxu1 %vm2194_vm4, %v2193_v19 }
 0x449   : > { %2167 = vrcp.f32 %v946_v0  ;;  %2019 = vmatprep.subr.bf16.mxu1 %v2105_v60 }
 0x44a   : > { %v2164_v1 = vpop.eup %2163 }
 0x44b   : > { %v952_v35 = vmul.f32 %v2164_v1, %v2156_v47 }
 0x44d   : > { %v956_v3 = vpack.c.bf16 %v952_v35, %v952_v35 }
 0x44f   : > { %2004 = vmatmul.mubr.msk.bf16.vlgmr.msra.gmra.mrb[24].mxu0 %vm910_vm6, %v956_v3 }
 0x450   : > { %2014 = vmatpush3.bf16.msra.mxu0 %v2460_v53  ;;  %2015 = vmatprep.mubr.msk.bf16.mxu0 %vm2194_vm4, %v2193_v19  ;;  %v2107_v19 = vld [vmem:[%s2642_s2 + $0x48] sm:$0xff]   ;;  %v2108_v53 = vld [vmem:[%s2642_s2 + $0x50] sm:$0xff]  }
 0x452   : > { %v2166_v37 = vpop.eup %2165 }
 0x453   : > { %v2168_v4 = vpop.eup %2167  ;;  %v953_v2 = vmul.f32 %v2166_v37, %v2158_v48 }
 0x454   : > { %v954_v6 = vmul.f32 %v2168_v4, %v2160_v49 }
 0x455   : > { %v957_v9 = vpack.c.bf16 %v953_v2, %v953_v2 }
 0x456   : > { %v958_v62 = vpack.c.bf16 %v954_v6, %v954_v6 }
 0x457   : > { %2010 = vmatmul.mubr.msk.bf16.vlgmr.msra.gmra.mrb[12].mxu1 %vm910_vm6, %v957_v9 }
 0x458   : > { %2016 = vmatmul.mubr.msk.bf16.vlgmr.msra.gmra.mrb[28].mxu0 %vm910_vm6, %v958_v62  ;;  %2020 = vmatpush3.bf16.msra.mxu1 %v2105_v60 }
 0x459   : > { %2021 = vmatprep.subr.bf16.mxu1 %v2106_v10  ;;  %2045 = vmatprep.mubr.msk.bf16.mxu0 %vm265_vm2, %v2260_v17 }
 0x45c   : > { %2022 = vmatpush3.bf16.msra.mxu1 %v2106_v10 }
 0x45d   : > { %2023 = vmatprep.subr.bf16.mxu1 %v2107_v19 }
 0x460   : > { %2024 = vmatpush3.bf16.msra.mxu1 %v2107_v19 }
 0x461   : > { %2025 = vmatprep.subr.bf16.mxu1 %v2108_v53 }
 0x464   : > { %2026 = vmatpush3.bf16.msra.mxu1 %v2108_v53 }
 0x465   : > { %2027 = vmatprep.subr.bf16.mxu1 %v2109_v12 }
 0x468   : > { %2028 = vmatpush3.bf16.msra.mxu1 %v2109_v12 }
 0x469   : > { %2029 = vmatprep.subr.bf16.mxu1 %v2110_v7 }
 0x46c   : > { %2030 = vmatpush3.bf16.msra.mxu1 %v2110_v7 }
 0x46d   : > { %2031 = vmatprep.subr.bf16.mxu1 %v2111_v32 }
 0x470   : > { %2032 = vmatpush3.bf16.msra.mxu1 %v2111_v32 }
 0x471   : > { %2033 = vmatprep.subr.bf16.mxu1 %v2112_v13 }
 0x474   : > { %2034 = vmatpush3.bf16.msra.mxu1 %v2112_v13 }
 0x51a   : > { %v996_v14 = vpop.f32.mrb[8].mxu1 }
 0x51b   : > { %v1999_v15 = vpop.f32.mrb[9].mxu1  ;;  %v1131_v21 = vmul.f32 %v996_v14, %v2408_v55  ;;  %v2116_v14 = vld [vmem:[%s2642_s2 + $0x90] sm:$0xff]  }
 0x51c   : > { %v999_v16 = vpop.f32.mrb[10].mxu1  ;;  %v2117_v15 = vld [vmem:[%s2642_s2 + $0x98] sm:$0xff]  }
 0x51d   : > { %v2000_v33 = vpop.f32.mrb[11].mxu1  ;;  %v2118_v16 = vld [vmem:[%s2642_s2 + $0xa0] sm:$0xff]  }
 0x522   : > { %v1039_v8 = vpop.f32.mrb[24].mxu0 }
 0x523   : > { %v1132_v36 = vmul.f32 %v1039_v8, %v2411_v57  ;;  %v2005_v22 = vpop.f32.mrb[25].mxu0  ;;  %v2113_v57 = vld [vmem:[%s2642_s2 + $0x78] sm:$0xff]  }
 0x524   : > { %v1042_v18 = vpop.f32.mrb[26].mxu0  ;;  %2039 = vmatprep.subr.bf16.mxu0 %v2113_v57 }
 0x525   : > { %v1135_v25 = vpack.c.bf16 %v1132_v36, %v1131_v21  ;;  %v2006_v27 = vpop.f32.mrb[27].mxu0  ;;  %2040 = vmatpush3.bf16.msra.mxu0 %v2113_v57 }
 0x526   : > { %2041 = vmatprep.subr.bf16.mxu0 %v2114_v38 }
 0x527   : > { %2035 = vmatprep.mubr.bf16.mxu1 %v1135_v25 }
 0x529   : > { %2042 = vmatpush3.bf16.msra.mxu0 %v2114_v38 }
 0x52a   : > { %v1082_v23 = vpop.f32.mrb[12].mxu1 }
 0x52b   : > { %v1133_v24 = vmul.f32 %v1082_v23, %v2417_v61  ;;  %v1125_v5 = vpop.f32.mrb[28].mxu0  ;;  %v2011_v26 = vpop.f32.mrb[13].mxu1  ;;  %v2115_v61 = vld [vmem:[%s2642_s2 + $0x88] sm:$0xff]  }
 0x52c   : > { %v1134_v41 = vmul.f32 %v1125_v5, %v2424_v11  ;;  %v2017_v28 = vpop.f32.mrb[29].mxu0  ;;  %v1085_v29 = vpop.f32.mrb[14].mxu1  ;;  %2043 = vmatprep.subr.bf16.mxu0 %v2115_v61  ;;  %v1834_v11 = vld [vmem:[%s2643_s3 + $0x6] ss:$0 sm:$0xff] }
 0x52d   : > { %v1128_v30 = vpop.f32.mrb[30].mxu0  ;;  %v2012_v34 = vpop.f32.mrb[15].mxu1  ;;  %2044 = vmatpush3.bf16.msra.mxu0 %v2115_v61  ;;  %v1843_v28 = vld [vmem:[%s2643_s3 + $0x7] ss:$0 sm:$0xff] }
 0x52e   : > { %v1136_v31 = vpack.c.bf16 %v1134_v41, %v1133_v24  ;;  %v2018_v55 = vpop.f32.mrb[31].mxu0  ;;  %2049 = vmatprep.subr.bf16.mxu0 %v2116_v14  ;;  %v1844_v34 = vld [vmem:[%s2643_s3 + $0x8] ss:$0 sm:$0xff] }
 0x530   : > { %2036 = vmatmul.mubr.bf16.vlgmr.msra.gmra.mrb[16].mxu1 %v1136_v31  ;;  %2046 = vmatmul.mubr.msk.bf16.vlgmr.msra.gmra.mrb[32].mxu0 %vm265_vm2, %v2267_v20 }
 0x531   : > { %2050 = vmatpush3.bf16.msra.mxu0 %v2116_v14 }
 0x532   : > { %2051 = vmatprep.subr.bf16.mxu0 %v2117_v15 }
 0x535   : > { %2052 = vmatpush3.bf16.msra.mxu0 %v2117_v15 }
 0x536   : > { %2057 = vmatprep.subr.bf16.mxu0 %v2118_v16 }
 0x603   : > { %v2037_v39 = vpop.f32.mrb[16].mxu1  ;;  %v2047_v12 = vpop.f32.mrb[32].mxu0 }
 0x604   : > { %v1240_v40 = vpop.f32.mrb[17].mxu1  ;;  %v2545_v46 = vadd.f32 %v2037_v39, %v1834_v11  ;;  %v1383_v7 = vpop.f32.mrb[33].mxu0 }
 0x605   : > { %v2543_v43 = vadd.f32 %v1834_v11, %v1240_v40  ;;  %v2038_v44 = vpop.f32.mrb[18].mxu1  ;;  %v2048_v32 = vpop.f32.mrb[34].mxu0  ;;  %v1384_v38 = vadd.f32 1.0, %v1383_v7 }
 0x606   : > { %v1243_v45 = vpop.f32.mrb[19].mxu1  ;;  %v2551_v48 = vadd.f32 %v2038_v44, %v1834_v11  ;;  %v1263_v50 = vsel %vm323_vm1, %v2545_v46, 0.0  ;;  %v1386_v13 = vpop.f32.mrb[35].mxu0 }
 0x607   : > { %v2547_v47 = vadd.f32 %v1834_v11, %v1243_v45  ;;  %v1257_v42 = vsel %vm323_vm1, %v2543_v43, 0.0  ;;  %v1387_v40 = vadd.f32 1.0, %v1386_v13 }
 0x608   : > { %1258 = vadd.xlane.f32.xlu0 %v1257_v42  ;;  %v1266_v52 = vsel %vm323_vm1, %v2551_v48, 0.0 }
 0x609   : > { %v1260_v49 = vsel %vm323_vm1, %v2547_v47, 0.0 }
 0x60a   : > { %1261 = vadd.xlane.f32.xlu1 %v1260_v49 }
 0x60c   : > { %1264 = vadd.xlane.f32.xlu0 %v1263_v50 }
 0x60e   : > { %1267 = vadd.xlane.f32.xlu1 %v1266_v52 }
 0x695   : > { %v1259_v51 = vpop.xlane.xlu0 %1258 }
 0x696   : > { %v1269_v54 = vmul.f32 0.03125, %v1259_v51 }
 0x697   : > { %v1262_v56 = vpop.xlane.xlu1 %1261 }
 0x698   : > { %v1273_v58 = vsub.f32 %v2543_v43, %v1269_v54  ;;  %v1270_v59 = vmul.f32 0.03125, %v1262_v56  ;;  %v1392_v56 = vadd.f32 1.0, %v2047_v12 }
 0x699   : > { %v1265_v60 = vpop.xlane.xlu0 %1264 }
 0x69a   : > { %v1274_v63 = vsub.f32 %v2547_v47, %v1270_v59  ;;  %v1271_v0 = vmul.f32 0.03125, %v1265_v60  ;;  %v1277_v1 = vmul.f32 %v1273_v58, %v1273_v58  ;;  %v1395_v59 = vadd.f32 1.0, %v2048_v32 }
 0x69b   : > { %v1268_v35 = vpop.xlane.xlu1 %1267 }
 0x69c   : > { %v1275_v3 = vsub.f32 %v2545_v46, %v1271_v0  ;;  %v1272_v37 = vmul.f32 0.03125, %v1268_v35  ;;  %v1281_v4 = vsel %vm323_vm1, %v1277_v1, 0.0  ;;  %v1278_v2 = vmul.f32 %v1274_v63, %v1274_v63  ;;  %v2119_v35 = vld [vmem:[%s2642_s2 + $0xa8] sm:$0xff]  }
 0x69d   : > { %1282 = vadd.xlane.f32.xlu0 %v1281_v4  ;;  %v2123_v4 = vld [vmem:[%s2642_s2 + $0xc8] sm:$0xff]  }
 0x69e   : > { %v1276_v6 = vsub.f32 %v2551_v48, %v1272_v37  ;;  %v1284_v9 = vsel %vm323_vm1, %v1278_v2, 0.0  ;;  %v1279_v10 = vmul.f32 %v1275_v3, %v1275_v3  ;;  %v2121_v37 = vld [vmem:[%s2642_s2 + $0xb8] sm:$0xff]  }
 0x69f   : > { %1285 = vadd.xlane.f32.xlu1 %v1284_v9  ;;  %2067 = vmatprep.subr.bf16.mxu1 %v2121_v37  ;;  %v2125_v2 = vld [vmem:[%s2642_s2 + $0xd8] sm:$0xff]   ;;  %v2127_v9 = vld [vmem:[%s2642_s2 + $0xe8] sm:$0xff]  }
 0x6a0   : > { %v1287_v62 = vsel %vm323_vm1, %v1279_v10, 0.0  ;;  %v1280_v19 = vmul.f32 %v1276_v6, %v1276_v6  ;;  %2068 = vmatpush3.bf16.msra.mxu1 %v2121_v37  ;;  %v2128_v10 = vld [vmem:[%s2642_s2 + $0xf0] sm:$0xff]  }
 0x6a1   : > { %1288 = vadd.xlane.f32.xlu0 %v1287_v62  ;;  %v1850_v62 = vld [vmem:[%s2643_s3 + $0x9] ss:$0 sm:$0xff] }
 0x6a2   : > { %v1290_v53 = vsel %vm323_vm1, %v1280_v19, 0.0 }
 0x6a3   : > { %1291 = vadd.xlane.f32.xlu1 %v1290_v53 }
 0x72a   : > { %v1283_v33 = vpop.xlane.xlu0 %1282 }
 0x72b   : > { %v1293_v8 = vmul.f32 0.03125, %v1283_v33 }
 0x72c   : > { %v1286_v21 = vpop.xlane.xlu1 %1285 }
 0x72d   : > { %v1297_v36 = vadd.f32 1e-05, %v1293_v8  ;;  %v1294_v22 = vmul.f32 0.03125, %v1286_v21 }
 0x72e   : > { %v1289_v18 = vpop.xlane.xlu0 %1288 }
 0x72f   : > { %2169 = vrsqrt.f32 %v1297_v36  ;;  %v1298_v25 = vadd.f32 1e-05, %v1294_v22  ;;  %v1295_v27 = vmul.f32 0.03125, %v1289_v18 }
 0x730   : > { %v1292_v23 = vpop.xlane.xlu1 %1291 }
 0x731   : > { %2171 = vrsqrt.f32 %v1298_v25  ;;  %v1299_v24 = vadd.f32 1e-05, %v1295_v27  ;;  %v1296_v5 = vmul.f32 0.03125, %v1292_v23 }
 0x733   : > { %2173 = vrsqrt.f32 %v1299_v24  ;;  %v1300_v26 = vadd.f32 1e-05, %v1296_v5 }
 0x735   : > { %2175 = vrsqrt.f32 %v1300_v26 }
 0x739   : > { %v2170_v41 = vpop.eup %2169 }
 0x73a   : > { %v1305_v29 = vmul.f32 %v2170_v41, %v1273_v58 }
 0x73b   : > { %v2172_v30 = vpop.eup %2171 }
 0x73c   : > { %v1313_v31 = vmul.f32 %v1843_v28, %v1305_v29  ;;  %v1306_v55 = vmul.f32 %v2172_v30, %v1274_v63 }
 0x73d   : > { %v2174_v57 = vpop.eup %2173 }
 0x73e   : > { %v1307_v61 = vmul.f32 %v2174_v57, %v1275_v3  ;;  %v1321_v11 = vadd.f32 %v1844_v34, %v1313_v31  ;;  %v1314_v39 = vmul.f32 %v1843_v28, %v1306_v55  ;;  %v2120_v3 = vld [vmem:[%s2642_s2 + $0xb0] sm:$0xff]  }
 0x73f   : > { %v2176_v44 = vpop.eup %2175 }
 0x740   : > { %v1315_v45 = vmul.f32 %v1843_v28, %v1307_v61  ;;  %v1308_v42 = vmul.f32 %v2176_v44, %v1276_v6  ;;  %v1322_v49 = vadd.f32 %v1844_v34, %v1314_v39  ;;  %v1398_v52 = vmul.f32 %v1384_v38, %v1321_v11  ;;  %v2126_v6 = vld [vmem:[%s2642_s2 + $0xe0] sm:$0xff]  }
 0x742   : > { %v1323_v50 = vadd.f32 %v1844_v34, %v1315_v45  ;;  %v1316_v51 = vmul.f32 %v1843_v28, %v1308_v42  ;;  %v1399_v54 = vmul.f32 %v1387_v40, %v1322_v49 }
 0x744   : > { %v1324_v58 = vadd.f32 %v1844_v34, %v1316_v51  ;;  %v1402_v60 = vpack.c.bf16 %v1399_v54, %v1398_v52  ;;  %v1400_v0 = vmul.f32 %v1392_v56, %v1323_v50 }
 0x746   : > { %v1401_v63 = vmul.f32 %v1395_v59, %v1324_v58  ;;  %2053 = vmatprep.mubr.msk.bf16.mxu0 %vm323_vm1, %v1402_v60 }
 0x748   : > { %v1403_v1 = vpack.c.bf16 %v1401_v63, %v1400_v0 }
 0x74a   : > { %2054 = vmatmul.mubr.msk.bf16.vlgmr.msra.gmra.mrb[36].mxu0 %vm323_vm1, %v1403_v1 }
 0x74b   : > { %2058 = vmatpush3.bf16.msra.mxu0 %v2118_v16  ;;  %2063 = vmatprep.mubr.msk.bf16.mxu0 %vm265_vm2, %v2260_v17  ;;  %v2122_v17 = vld [vmem:[%s2642_s2 + $0xc0] sm:$0xff]  }
 0x74c   : > { %2059 = vmatprep.subr.bf16.mxu0 %v2119_v35  ;;  %2069 = vmatprep.subr.bf16.mxu1 %v2122_v17 }
 0x74d   : > { %2070 = vmatpush3.bf16.msra.mxu1 %v2122_v17 }
 0x74e   : > { %2071 = vmatprep.subr.bf16.mxu1 %v2123_v4 }
 0x74f   : > { %2060 = vmatpush3.bf16.msra.mxu0 %v2119_v35 }
 0x750   : > { %2061 = vmatprep.subr.bf16.mxu0 %v2120_v3 }
 0x751   : > { %2072 = vmatpush3.bf16.msra.mxu1 %v2123_v4 }
 0x753   : > { %2062 = vmatpush3.bf16.msra.mxu0 %v2120_v3 }
 0x756   : > { %2064 = vmatmul.mubr.msk.bf16.vlgmr.msra.gmra.mrb[40].mxu0 %vm265_vm2, %v2267_v20  ;;  %v2124_v20 = vld [vmem:[%s2642_s2 + $0xd0] sm:$0xff]  }
 0x757   : > { %2073 = vmatprep.subr.bf16.mxu1 %v2124_v20 }
 0x758   : > { %2074 = vmatpush3.bf16.msra.mxu1 %v2124_v20 }
 0x759   : > { %2075 = vmatprep.subr.bf16.mxu1 %v2125_v2 }
 0x75c   : > { %2076 = vmatpush3.bf16.msra.mxu1 %v2125_v2 }
 0x75d   : > { %2077 = vmatprep.subr.bf16.mxu1 %v2126_v6 }
 0x760   : > { %2078 = vmatpush3.bf16.msra.mxu1 %v2126_v6 }
 0x761   : > { %2079 = vmatprep.subr.bf16.mxu1 %v2127_v9 }
 0x764   : > { %2080 = vmatpush3.bf16.msra.mxu1 %v2127_v9 }
 0x765   : > { %2081 = vmatprep.subr.bf16.mxu1 %v2128_v10 }
 0x768   : > { %2082 = vmatpush3.bf16.msra.mxu1 %v2128_v10  ;;  %v1860_v10 = vld [vmem:[%s2643_s3 + $0xa] ss:$0 sm:$0xff] }
 0x81d   : > { %v2055_v19 = vpop.f32.mrb[36].mxu0 }
 0x81e   : > { %v1474_v53 = vadd.f32 %v2055_v19, %v1850_v62  ;;  %v1465_v12 = vpop.f32.mrb[37].mxu0 }
 0x81f   : > { %v1466_v7 = vadd.f32 %v1850_v62, %v1465_v12  ;;  %v2056_v32 = vpop.f32.mrb[38].mxu0 }
 0x820   : > { %v1482_v13 = vmul.f32 %v1474_v53, %v1474_v53  ;;  %v1477_v14 = vadd.f32 %v2056_v32, %v1850_v62  ;;  %v1468_v15 = vpop.f32.mrb[39].mxu0 }
 0x821   : > { %v1480_v16 = vmul.f32 %v1466_v7, %v1466_v7  ;;  %v1469_v33 = vadd.f32 %v1850_v62, %v1468_v15 }
 0x822   : > { %v1486_v8 = vmul.f32 %v1482_v13, %v1474_v53  ;;  %v1483_v21 = vmul.f32 %v1477_v14, %v1477_v14 }
 0x823   : > { %v1484_v36 = vmul.f32 %v1480_v16, %v1466_v7  ;;  %v1481_v22 = vmul.f32 %v1469_v33, %v1469_v33 }
 0x824   : > { %v1490_v18 = vmul.f32 0.044715, %v1486_v8  ;;  %v1487_v25 = vmul.f32 %v1483_v21, %v1477_v14 }
 0x825   : > { %v1488_v27 = vmul.f32 0.044715, %v1484_v36  ;;  %v1485_v23 = vmul.f32 %v1481_v22, %v1469_v33 }
 0x826   : > { %v1494_v24 = vadd.f32 %v1490_v18, %v1474_v53  ;;  %v1491_v5 = vmul.f32 0.044715, %v1487_v25 }
 0x827   : > { %v1492_v26 = vadd.f32 %v1488_v27, %v1466_v7  ;;  %v1489_v41 = vmul.f32 0.044715, %v1485_v23 }
 0x828   : > { %v1498_v28 = vmul.f32 0.7978846, %v1494_v24  ;;  %v1495_v29 = vadd.f32 %v1491_v5, %v1477_v14 }
 0x829   : > { %v1496_v30 = vmul.f32 0.7978846, %v1492_v26  ;;  %v1493_v34 = vadd.f32 %v1489_v41, %v1469_v33  ;;  %v2065_v31 = vpop.f32.mrb[40].mxu0 }
 0x82a   : > { %2177 = vtanh.f32 %v1498_v28  ;;  %v1499_v55 = vmul.f32 0.7978846, %v1495_v29  ;;  %v1574_v57 = vpop.f32.mrb[41].mxu0  ;;  %v1583_v52 = vadd.f32 1.0, %v2065_v31 }
 0x82b   : > { %2179 = vtanh.f32 %v1496_v30  ;;  %v1497_v38 = vmul.f32 0.7978846, %v1493_v34  ;;  %v2066_v61 = vpop.f32.mrb[42].mxu0  ;;  %v1575_v56 = vadd.f32 1.0, %v1574_v57 }
 0x82c   : > { %2181 = vtanh.f32 %v1499_v55  ;;  %v1577_v11 = vpop.f32.mrb[43].mxu0  ;;  %v1586_v3 = vadd.f32 1.0, %v2066_v61 }
 0x82d   : > { %2183 = vtanh.f32 %v1497_v38  ;;  %v1578_v4 = vadd.f32 1.0, %v1577_v11 }
 0x834   : > { %v2178_v39 = vpop.eup %2177 }
 0x835   : > { %v2180_v40 = vpop.eup %2179  ;;  %v1506_v44 = vadd.f32 1.0, %v2178_v39 }
 0x836   : > { %v2182_v45 = vpop.eup %2181  ;;  %v1504_v42 = vadd.f32 1.0, %v2180_v40 }
 0x837   : > { %v2184_v49 = vpop.eup %2183  ;;  %v1510_v50 = vmul.f32 0.5, %v1506_v44  ;;  %v1507_v51 = vadd.f32 1.0, %v2182_v45 }
 0x838   : > { %v1508_v54 = vmul.f32 0.5, %v1504_v42  ;;  %v1505_v58 = vadd.f32 1.0, %v2184_v49 }
 0x839   : > { %v1514_v59 = vmul.f32 %v1510_v50, %v1474_v53  ;;  %v1511_v60 = vmul.f32 0.5, %v1507_v51 }
 0x83a   : > { %v1512_v0 = vmul.f32 %v1508_v54, %v1466_v7  ;;  %v1509_v63 = vmul.f32 0.5, %v1505_v58 }
 0x83b   : > { %v1591_v1 = vmul.f32 %v1583_v52, %v1514_v59  ;;  %v1515_v35 = vmul.f32 %v1511_v60, %v1477_v14 }
 0x83c   : > { %v1589_v37 = vmul.f32 %v1575_v56, %v1512_v0  ;;  %v1513_v17 = vmul.f32 %v1509_v63, %v1469_v33 }
 0x83d   : > { %v1592_v20 = vmul.f32 %v1586_v3, %v1515_v35 }
 0x83e   : > { %v1590_v2 = vmul.f32 %v1578_v4, %v1513_v17 }
 0x83f   : > { %v1594_v6 = vpack.c.bf16 %v1592_v20, %v1591_v1 }
 0x840   : > { %v1593_v9 = vpack.c.bf16 %v1590_v2, %v1589_v37 }
 0x842   : > { %2083 = vmatprep.mubr.bf16.mxu1 %v1593_v9 }
 0x843   : > { %2084 = vmatmul.mubr.bf16.vlgmr.msra.gmra.mrb[20].mxu1 %v1594_v6 }
 0x916   : > { %v2085_v62 = vpop.f32.mrb[20].mxu1 }
 0x917   : > { %v1698_v19 = vpop.f32.mrb[21].mxu1  ;;  %v1707_v7 = vadd.f32 %v2085_v62, %v1860_v10 }
 0x918   : > { %v1699_v53 = vadd.f32 %v1860_v10, %v1698_v19  ;;  %v2086_v12 = vpop.f32.mrb[22].mxu1 }
 0x919   : > { %v1701_v32 = vpop.f32.mrb[23].mxu1  ;;  %v1710_v14 = vadd.f32 %v2086_v12, %v1860_v10  ;;  %v1715_v33 = vadd.f32 %v1707_v7, %v2545_v46 }
 0x91a   : > { %v1713_v13 = vadd.f32 %v1699_v53, %v2543_v43  ;;  %v1702_v15 = vadd.f32 %v1860_v10, %v1701_v32 }
 0x91b   : > { %v1716_v8 = vadd.f32 %v1710_v14, %v2551_v48  ;;  %1719 = vst.msk [vmem:[%s224_s19 + $0x10] sm:$0xff] %vm323_vm1, %v1715_v33 }
 0x91c   : > { %1717 = vst.msk [vmem:[%s224_s19] sm:$0xff] %vm323_vm1, %v1713_v13  ;;  %v1714_v16 = vadd.f32 %v1702_v15, %v2547_v47 }
 0x91d   : > { %1720 = vst.msk [vmem:[%s224_s19 + $0x18] sm:$0xff] %vm323_vm1, %v1716_v8 }
 0x91e   : > { %1718 = vst.msk [vmem:[%s224_s19 + $0x8] sm:$0xff] %vm323_vm1, %v1714_v16 }
 0x91f PF: > { %s14_s15 = sadd.s32 1, %s2191_s15  }
 0x920   : > { %p11_p4 = scmp.ge.s32.totalorder %s14_s15, 4  }
 0x922   :  { %13 = sbr.rel (!%p11_p4) target bundleno = 1 (0x1), region = 69 }

</bundles_post_ra>
